<compile_context>
chip_gen: v7x
topology: tpu7x:2x2x1
jax: 0.10.0
libtpu: 0.0.40
codegen_flags: <defaults>
</compile_context>

<pallas_src>
import numpy as np
import jax
import jax.numpy as jnp
from jax.experimental import pallas as pl
from jax.experimental.pallas import tpu as pltpu

# ---------------- configuration (matches MVAdapt defaults) ----------------
MAX_LEN = 8        # gear_max_length
EMBED = 16         # FowardGearEncoder embed_dim
HEADS = 4
HEAD_DIM = EMBED // HEADS
FF_DIM = 64
LAYERS = 2
GEAR_DIM = 4       # gear encoder output_dim
PHYS_DIM = 15      # physics_input_dim
HID = 64           # PhysicsEncoder hidden width
D0 = 8             # layer_dim0
D1 = 8             # layer_dim1
N0, N1, N2 = 3 * D0, D0 * D1, D1 * 3
LATENT = N0 + N1 + N2                  # physics_latent_dim = 112
LN_EPS = 1e-5

# ---------------- packed-slab row offsets (all multi-row loads 8-aligned) ----------------
# per-layer transformer slab (lane width 128)
L_WQ, L_WK, L_WV, L_WO = 0, 16, 32, 48
L_BQ, L_BK, L_BV, L_BO = 64, 65, 66, 67
L_LN1G, L_LN1B, L_LN2G, L_LN2B = 68, 69, 70, 71
L_FF1W, L_FF1B = 72, 88
L_FF2W, L_FF2B = 96, 160
LROWS = 168                                        # rows per layer (multiple of 8)

# misc slab (lane width 128)
M_EMBW, M_EMBB = 0, 3
M_POS = 8
M_FCW, M_FCB = 16, 32
M_E1WP, M_E1WG, M_E1B = 40, 56, 60
M_E2W0, M_E2W1, M_E2W2 = 64, 128, 192
M_E2B0, M_E2B1, M_E2B2 = 256, 257, 258
M_T0, M_R0 = 264, 272
M_T1, M_R1 = 296, 304
M_T2, M_R2 = 368, 376
M_HM = 400                                         # (HEADS*MAX_LEN, EMBED) head lane mask
MROWS = 432


def _layer_norm(x, gamma, beta):
    mu = jnp.mean(x, axis=-1, keepdims=True)
    var = jnp.mean(jnp.square(x - mu), axis=-1, keepdims=True)
    return (x - mu) * jax.lax.rsqrt(var + LN_EPS) * gamma + beta


# ---------------------------------------------------------------------------------
# Single fused kernel
# ---------------------------------------------------------------------------------
def mvadapt_kernel(gear_ref,    # (MAX_LEN, 3)   padded gear sequence
                   maskb_ref,   # (1, MAX_LEN)   additive key-padding bias (0 / -1e30)
                   phys_ref,    # (1, PHYS_DIM)
                   ctrl_ref,    # (1, 3)         [throttle, steer, brake]
                   lay_ref,     # (LAYERS*LROWS, 128)  packed per-layer transformer params
                   misc_ref,    # (MROWS, 128)         packed misc params + constants
                   out_ref):    # (1, 128)       lanes 0..2 = [sigmoid, tanh, sigmoid] outputs
    scale = 1.0 / float(HEAD_DIM) ** 0.5

    mask_bias = maskb_ref[...]                                           # (1, S)  hoisted
    hm = misc_ref[M_HM:M_HM + HEADS * MAX_LEN, 0:EMBED]                  # (H*S, E) head mask

    # --- gear embedding + positional encoding ---
    emb_w = misc_ref[M_EMBW:M_EMBW + 3, 0:EMBED]
    emb_b = misc_ref[M_EMBB:M_EMBB + 1, 0:EMBED]
    pos = misc_ref[M_POS:M_POS + MAX_LEN, 0:EMBED]
    h = jnp.dot(gear_ref[...], emb_w, preferred_element_type=jnp.float32) + emb_b + pos

    # --- post-norm transformer encoder layers (dropout = identity) ---
    for l in range(LAYERS):
        b = l * LROWS
        wq = lay_ref[b + L_WQ:b + L_WQ + EMBED, 0:EMBED]
        wk = lay_ref[b + L_WK:b + L_WK + EMBED, 0:EMBED]
        wv = lay_ref[b + L_WV:b + L_WV + EMBED, 0:EMBED]
        wo = lay_ref[b + L_WO:b + L_WO + EMBED, 0:EMBED]
        bq = lay_ref[b + L_BQ:b + L_BQ + 1, 0:EMBED]
        bk = lay_ref[b + L_BK:b + L_BK + 1, 0:EMBED]
        bv = lay_ref[b + L_BV:b + L_BV + 1, 0:EMBED]
        bo = lay_ref[b + L_BO:b + L_BO + 1, 0:EMBED]

        q = jnp.dot(h, wq, preferred_element_type=jnp.float32) + bq      # (S, E)
        k = jnp.dot(h, wk, preferred_element_type=jnp.float32) + bk      # (S, E)
        v = jnp.dot(h, wv, preferred_element_type=jnp.float32) + bv      # (S, E)

        # head-stacked scores: rows [hd*S:(hd+1)*S] == Q_hd @ K_hd^T  (one MXU op)
        q_stack = jnp.concatenate([q] * HEADS, axis=0) * hm              # (H*S, E)
        scores = jax.lax.dot_general(
            q_stack, k, (((1,), (1,)), ((), ())),
            preferred_element_type=jnp.float32) * scale + mask_bias      # (H*S, S)

        # softmax batched over all heads at once
        m = jnp.max(scores, axis=-1, keepdims=True)
        e = jnp.exp(scores - m)
        p = e / jnp.sum(e, axis=-1, keepdims=True)                       # (H*S, S)

        # attention * V for all heads in one matmul, then head-select + combine
        pv = jnp.dot(p, v, preferred_element_type=jnp.float32) * hm      # (H*S, E)
        ctx = (pv[0 * MAX_LEN:1 * MAX_LEN, :] + pv[1 * MAX_LEN:2 * MAX_LEN, :] +
               pv[2 * MAX_LEN:3 * MAX_LEN, :] + pv[3 * MAX_LEN:4 * MAX_LEN, :])  # (S, E)

        attn_out = jnp.dot(ctx, wo, preferred_element_type=jnp.float32) + bo
        h = _layer_norm(h + attn_out,
                        lay_ref[b + L_LN1G:b + L_LN1G + 1, 0:EMBED],
                        lay_ref[b + L_LN1B:b + L_LN1B + 1, 0:EMBED])

        ff1w = lay_ref[b + L_FF1W:b + L_FF1W + EMBED, 0:FF_DIM]
        ff1b = lay_ref[b + L_FF1B:b + L_FF1B + 1, 0:FF_DIM]
        ff2w = lay_ref[b + L_FF2W:b + L_FF2W + FF_DIM, 0:EMBED]
        ff2b = lay_ref[b + L_FF2B:b + L_FF2B + 1, 0:EMBED]
        f = jnp.maximum(jnp.dot(h, ff1w, preferred_element_type=jnp.float32) + ff1b, 0.0)
        f = jnp.dot(f, ff2w, preferred_element_type=jnp.float32) + ff2b
        h = _layer_norm(h + f,
                        lay_ref[b + L_LN2G:b + L_LN2G + 1, 0:EMBED],
                        lay_ref[b + L_LN2B:b + L_LN2B + 1, 0:EMBED])

    # --- mean-pool over MAX_LEN (padded positions included, as in the reference) + fc ---
    pooled = jnp.mean(h, axis=0, keepdims=True)                          # (1, E)
    gear_latent = (jnp.dot(pooled, misc_ref[M_FCW:M_FCW + EMBED, 0:GEAR_DIM],
                           preferred_element_type=jnp.float32)
                   + misc_ref[M_FCB:M_FCB + 1, 0:GEAR_DIM])              # (1, GEAR_DIM)

    # --- PhysicsEncoder MLP (concat(physics, gear_latent) expressed as split matmul) ---
    e1 = (jnp.dot(phys_ref[...], misc_ref[M_E1WP:M_E1WP + PHYS_DIM, 0:HID],
                  preferred_element_type=jnp.float32)
          + jnp.dot(gear_latent, misc_ref[M_E1WG:M_E1WG + GEAR_DIM, 0:HID],
                    preferred_element_type=jnp.float32)
          + misc_ref[M_E1B:M_E1B + 1, 0:HID])
    e1 = jnp.maximum(e1, 0.0)                                            # (1, 64)

    # enc2 split into the three dynamic-weight blocks (row-major flats of W0, W1, W2)
    lat0 = (jnp.dot(e1, misc_ref[M_E2W0:M_E2W0 + HID, 0:N0], preferred_element_type=jnp.float32)
            + misc_ref[M_E2B0:M_E2B0 + 1, 0:N0])                         # (1, 24) = W0.flat
    lat1 = (jnp.dot(e1, misc_ref[M_E2W1:M_E2W1 + HID, 0:N1], preferred_element_type=jnp.float32)
            + misc_ref[M_E2B1:M_E2B1 + 1, 0:N1])                         # (1, 64) = W1.flat
    lat2 = (jnp.dot(e1, misc_ref[M_E2W2:M_E2W2 + HID, 0:N2], preferred_element_type=jnp.float32)
            + misc_ref[M_E2B2:M_E2B2 + 1, 0:N2])                         # (1, 24) = W2.flat

    # --- dynamically-weighted MLP: x @ W^T via one-hot tile (T) / reduce (R) matrices ---
    # h_out[j] = sum_i x[i] * W[j, i]  with  W[j, i] = lat[dim*j + i]
    ctrl = ctrl_ref[...]                                                 # (1, 3)
    t0 = misc_ref[M_T0:M_T0 + 3, 0:N0]
    r0 = misc_ref[M_R0:M_R0 + N0, 0:D0]
    h0 = jnp.maximum(
        jnp.dot(jnp.dot(ctrl, t0, preferred_element_type=jnp.float32) * lat0, r0,
                preferred_element_type=jnp.float32), 0.0)                # (1, D0)
    t1 = misc_ref[M_T1:M_T1 + D0, 0:N1]
    r1 = misc_ref[M_R1:M_R1 + N1, 0:D1]
    h1 = jnp.maximum(
        jnp.dot(jnp.dot(h0, t1, preferred_element_type=jnp.float32) * lat1, r1,
                preferred_element_type=jnp.float32), 0.0)                # (1, D1)
    t2 = misc_ref[M_T2:M_T2 + D1, 0:N2]
    r2 = misc_ref[M_R2:M_R2 + N2, 0:128]          # only cols 0:3 nonzero -> lane-dense result
    y = jnp.dot(jnp.dot(h1, t2, preferred_element_type=jnp.float32) * lat2, r2,
                preferred_element_type=jnp.float32)                      # (1, 128)

    # output heads: [sigmoid(throttle), tanh(steer), sigmoid(brake)] in lanes 0..2
    lane = jax.lax.broadcasted_iota(jnp.int32, y.shape, 1)
    sig = 1.0 / (1.0 + jnp.exp(-y))
    out_ref[...] = jnp.where(lane == 1, jnp.tanh(y), sig)


# ---------------------------------------------------------------------------------
# Wrapper
# ---------------------------------------------------------------------------------
_VMEM = lambda: pl.BlockSpec(memory_space=pltpu.MemorySpace.VMEM)


@jax.jit
def mvadapt_forward(control, physics, gear_padded, mask_bias, layer_slab, misc_slab):
    out = pl.pallas_call(
        mvadapt_kernel,
        out_shape=jax.ShapeDtypeStruct((1, 128), jnp.float32),
        in_specs=[_VMEM() for _ in range(6)],
        out_specs=_VMEM(),
    )(gear_padded, mask_bias, physics, control, layer_slab, misc_slab)
    return out[:, :3]      # (1, 3) = [throttle, steer, brake]


# ---------------------------------------------------------------------------------
# Host-side parameter packing (done once)
# ---------------------------------------------------------------------------------
def pack_params(params):
    p = {k: np.asarray(v, dtype=np.float32) for k, v in params.items()}

    lay = np.zeros((LAYERS * LROWS, 128), np.float32)
    for l in range(LAYERS):
        b = l * LROWS
        # per-head (E, Hd) weights -> (E, E) with head-major columns
        lay[b + L_WQ:b + L_WQ + EMBED, :EMBED] = p["wq"][l].transpose(1, 0, 2).reshape(EMBED, EMBED)
        lay[b + L_WK:b + L_WK + EMBED, :EMBED] = p["wk"][l].transpose(1, 0, 2).reshape(EMBED, EMBED)
        lay[b + L_WV:b + L_WV + EMBED, :EMBED] = p["wv"][l].transpose(1, 0, 2).reshape(EMBED, EMBED)
        # per-head (Hd, E) out-proj slices -> (E, E) with head-major rows
        lay[b + L_WO:b + L_WO + EMBED, :EMBED] = p["wo"][l].reshape(EMBED, EMBED)
        lay[b + L_BQ, :EMBED] = p["bq"][l].transpose(1, 0, 2).reshape(EMBED)
        lay[b + L_BK, :EMBED] = p["bk"][l].transpose(1, 0, 2).reshape(EMBED)
        lay[b + L_BV, :EMBED] = p["bv"][l].transpose(1, 0, 2).reshape(EMBED)
        lay[b + L_BO, :EMBED] = p["bo"][l].reshape(EMBED)
        lay[b + L_LN1G, :EMBED] = p["ln1_g"][l].reshape(EMBED)
        lay[b + L_LN1B, :EMBED] = p["ln1_b"][l].reshape(EMBED)
        lay[b + L_LN2G, :EMBED] = p["ln2_g"][l].reshape(EMBED)
        lay[b + L_LN2B, :EMBED] = p["ln2_b"][l].reshape(EMBED)
        lay[b + L_FF1W:b + L_FF1W + EMBED, :FF_DIM] = p["ff1_wt"][l]
        lay[b + L_FF1B, :FF_DIM] = p["ff1_b"][l].reshape(FF_DIM)
        lay[b + L_FF2W:b + L_FF2W + FF_DIM, :EMBED] = p["ff2_wt"][l]
        lay[b + L_FF2B, :EMBED] = p["ff2_b"][l].reshape(EMBED)

    misc = np.zeros((MROWS, 128), np.float32)
    misc[M_EMBW:M_EMBW + 3, :EMBED] = p["emb_wt"]
    misc[M_EMBB, :EMBED] = p["emb_b"].reshape(EMBED)
    misc[M_POS:M_POS + MAX_LEN, :EMBED] = p["pos"]
    misc[M_FCW:M_FCW + EMBED, :GEAR_DIM] = p["fc_wt"]
    misc[M_FCB, :GEAR_DIM] = p["fc_b"].reshape(GEAR_DIM)
    misc[M_E1WP:M_E1WP + PHYS_DIM, :HID] = p["enc1_wt_p"]
    misc[M_E1WG:M_E1WG + GEAR_DIM, :HID] = p["enc1_wt_g"]
    misc[M_E1B, :HID] = p["enc1_b"].reshape(HID)
    e2w, e2b = p["enc2_wt"], p["enc2_b"].reshape(LATENT)
    misc[M_E2W0:M_E2W0 + HID, :N0] = e2w[:, :N0]
    misc[M_E2W1:M_E2W1 + HID, :N1] = e2w[:, N0:N0 + N1]
    misc[M_E2W2:M_E2W2 + HID, :N2] = e2w[:, N0 + N1:]
    misc[M_E2B0, :N0] = e2b[:N0]
    misc[M_E2B1, :N1] = e2b[N0:N0 + N1]
    misc[M_E2B2, :N2] = e2b[N0 + N1:]
    # one-hot "tile" (T) and "reduce" (R) matrices implementing x @ lat.view(out, in).T
    misc[M_T0:M_T0 + 3, :N0] = (np.arange(N0)[None, :] % 3 == np.arange(3)[:, None]).astype(np.float32)
    misc[M_R0:M_R0 + N0, :D0] = (np.arange(N0)[:, None] // 3 == np.arange(D0)[None, :]).astype(np.float32)
    misc[M_T1:M_T1 + D0, :N1] = (np.arange(N1)[None, :] % D0 == np.arange(D0)[:, None]).astype(np.float32)
    misc[M_R1:M_R1 + N1, :D1] = (np.arange(N1)[:, None] // D0 == np.arange(D1)[None, :]).astype(np.float32)
    misc[M_T2:M_T2 + D1, :N2] = (np.arange(N2)[None, :] % D1 == np.arange(D1)[:, None]).astype(np.float32)
    misc[M_R2:M_R2 + N2, :3] = (np.arange(N2)[:, None] // D1 == np.arange(3)[None, :]).astype(np.float32)
    # head lane-mask: HM[hd*S + i, c] = 1 iff lane c belongs to head hd
    row = np.arange(HEADS * MAX_LEN)[:, None]
    col = np.arange(EMBED)[None, :]
    misc[M_HM:M_HM + HEADS * MAX_LEN, :EMBED] = ((col // HEAD_DIM) == (row // MAX_LEN)).astype(np.float32)

    return jnp.asarray(lay), jnp.asarray(misc)


# ---------------------------------------------------------------------------------
# Deterministic synthetic parameters (shapes follow MVAdapt.__init__)
# ---------------------------------------------------------------------------------
def init_params(key):
    ks = iter(jax.random.split(key, 40))

    def rnd(shape, scale=0.2):
        return scale * jax.random.normal(next(ks), shape, dtype=jnp.float32)

    return {
        "emb_wt": rnd((3, EMBED)),
        "emb_b": rnd((1, EMBED)),
        "pos": rnd((MAX_LEN, EMBED)),
        "wq": rnd((LAYERS, HEADS, EMBED, HEAD_DIM)),
        "wk": rnd((LAYERS, HEADS, EMBED, HEAD_DIM)),
        "wv": rnd((LAYERS, HEADS, EMBED, HEAD_DIM)),
        "bq": rnd((LAYERS, HEADS, 1, HEAD_DIM)),
        "bk": rnd((LAYERS, HEADS, 1, HEAD_DIM)),
        "bv": rnd((LAYERS, HEADS, 1, HEAD_DIM)),
        "wo": rnd((LAYERS, HEADS, HEAD_DIM, EMBED)),
        "bo": rnd((LAYERS, 1, EMBED)),
        "ln1_g": jnp.ones((LAYERS, 1, EMBED), jnp.float32),
        "ln1_b": jnp.zeros((LAYERS, 1, EMBED), jnp.float32),
        "ln2_g": jnp.ones((LAYERS, 1, EMBED), jnp.float32),
        "ln2_b": jnp.zeros((LAYERS, 1, EMBED), jnp.float32),
        "ff1_wt": rnd((LAYERS, EMBED, FF_DIM)),
        "ff1_b": rnd((LAYERS, 1, FF_DIM)),
        "ff2_wt": rnd((LAYERS, FF_DIM, EMBED)),
        "ff2_b": rnd((LAYERS, 1, EMBED)),
        "fc_wt": rnd((EMBED, GEAR_DIM)),
        "fc_b": rnd((1, GEAR_DIM)),
        "enc1_wt_p": rnd((PHYS_DIM, HID)),
        "enc1_wt_g": rnd((GEAR_DIM, HID)),
        "enc1_b": rnd((1, HID)),
        "enc2_wt": rnd((HID, LATENT), scale=0.05),
        "enc2_b": rnd((1, LATENT), scale=0.05),
    }


if __name__ == "__main__":
    root = jax.random.PRNGKey(0)
    k_par, k_gear, k_phys = jax.random.split(root, 3)

    params = init_params(k_par)
    layer_slab, misc_slab = pack_params(params)      # packed once, reused every call

    # gear_params: 6 gears, each a 3-vector; pad to MAX_LEN with key-padding bias
    n_gears = 6
    gear_raw = jax.random.uniform(k_gear, (n_gears, 3), dtype=jnp.float32)
    gear_padded = jnp.zeros((MAX_LEN, 3), jnp.float32).at[:n_gears].set(gear_raw)
    mask_bias = jnp.where(jnp.arange(MAX_LEN) < n_gears, 0.0, -1e30).astype(jnp.float32)
    mask_bias = mask_bias.reshape(1, MAX_LEN)

    # physics_params (15,) -> (1, 15); control_input.(throttle, steer, brake) -> (1, 3)
    physics = jax.random.normal(k_phys, (1, PHYS_DIM), dtype=jnp.float32)
    control = jnp.array([[0.7, -0.2, 0.1]], dtype=jnp.float32)

    out = mvadapt_forward(control, physics, gear_padded, mask_bias, layer_slab, misc_slab)
    out = jax.block_until_ready(out)
    assert out.shape == (1, 3) and out.dtype == jnp.float32
    assert bool(jnp.all(jnp.isfinite(out)))
    print("KERNEL_OK")
</pallas_src>

<mosaic_0001>
module attributes {stable_mosaic.version = 11 : i64} {
  func.func @mvadapt_kernel(%arg0: memref<8x3xf32, #tpu.memory_space<vmem>>, %arg1: memref<1x8xf32, #tpu.memory_space<vmem>>, %arg2: memref<1x15xf32, #tpu.memory_space<vmem>>, %arg3: memref<1x3xf32, #tpu.memory_space<vmem>>, %arg4: memref<336x128xf32, #tpu.memory_space<vmem>>, %arg5: memref<432x128xf32, #tpu.memory_space<vmem>>, %arg6: memref<1x128xf32, #tpu.memory_space<vmem>>) attributes {dimension_semantics = [], scalar_prefetch = 0 : i64, scratch_operands = 0 : i64, tpu.core_type = #tpu.core_type<tc>} {
    %c0 = arith.constant 0 : index
    %c0_0 = arith.constant 0 : index
    %0 = vector.load %arg1[%c0, %c0_0] : memref<1x8xf32, #tpu.memory_space<vmem>>, vector<1x8xf32>
    %c400 = arith.constant 400 : index
    %c0_1 = arith.constant 0 : index
    %1 = vector.load %arg5[%c400, %c0_1] : memref<432x128xf32, #tpu.memory_space<vmem>>, vector<32x16xf32>
    %c0_2 = arith.constant 0 : index
    %c0_3 = arith.constant 0 : index
    %2 = vector.load %arg5[%c0_2, %c0_3] : memref<432x128xf32, #tpu.memory_space<vmem>>, vector<3x16xf32>
    %c3 = arith.constant 3 : index
    %c0_4 = arith.constant 0 : index
    %3 = vector.load %arg5[%c3, %c0_4] : memref<432x128xf32, #tpu.memory_space<vmem>>, vector<1x16xf32>
    %c8 = arith.constant 8 : index
    %c0_5 = arith.constant 0 : index
    %4 = vector.load %arg5[%c8, %c0_5] : memref<432x128xf32, #tpu.memory_space<vmem>>, vector<8x16xf32>
    %c0_6 = arith.constant 0 : index
    %c0_7 = arith.constant 0 : index
    %5 = vector.load %arg0[%c0_6, %c0_7] : memref<8x3xf32, #tpu.memory_space<vmem>>, vector<8x3xf32>
    %cst = arith.constant dense<0.000000e+00> : vector<8x16xf32>
    %6 = tpu.matmul %5, %2, %cst {dimension_numbers = #tpu.dot_dimension_numbers<[1], [0], [0], [1], [0, 0, 1, 1], [], []>} : vector<8x3xf32>, vector<3x16xf32>, vector<8x16xf32> -> vector<8x16xf32>
    %7 = vector.broadcast %3 : vector<1x16xf32> to vector<8x16xf32>
    %8 = arith.addf %6, %7 : vector<8x16xf32>
    %9 = arith.addf %8, %4 : vector<8x16xf32>
    %c0_8 = arith.constant 0 : index
    %c0_9 = arith.constant 0 : index
    %10 = vector.load %arg4[%c0_8, %c0_9] : memref<336x128xf32, #tpu.memory_space<vmem>>, vector<16x16xf32>
    %c16 = arith.constant 16 : index
    %c0_10 = arith.constant 0 : index
    %11 = vector.load %arg4[%c16, %c0_10] : memref<336x128xf32, #tpu.memory_space<vmem>>, vector<16x16xf32>
    %c32 = arith.constant 32 : index
    %c0_11 = arith.constant 0 : index
    %12 = vector.load %arg4[%c32, %c0_11] : memref<336x128xf32, #tpu.memory_space<vmem>>, vector<16x16xf32>
    %c48 = arith.constant 48 : index
    %c0_12 = arith.constant 0 : index
    %13 = vector.load %arg4[%c48, %c0_12] : memref<336x128xf32, #tpu.memory_space<vmem>>, vector<16x16xf32>
    %c64 = arith.constant 64 : index
    %c0_13 = arith.constant 0 : index
    %14 = vector.load %arg4[%c64, %c0_13] : memref<336x128xf32, #tpu.memory_space<vmem>>, vector<1x16xf32>
    %c65 = arith.constant 65 : index
    %c0_14 = arith.constant 0 : index
    %15 = vector.load %arg4[%c65, %c0_14] : memref<336x128xf32, #tpu.memory_space<vmem>>, vector<1x16xf32>
    %c66 = arith.constant 66 : index
    %c0_15 = arith.constant 0 : index
    %16 = vector.load %arg4[%c66, %c0_15] : memref<336x128xf32, #tpu.memory_space<vmem>>, vector<1x16xf32>
    %c67 = arith.constant 67 : index
    %c0_16 = arith.constant 0 : index
    %17 = vector.load %arg4[%c67, %c0_16] : memref<336x128xf32, #tpu.memory_space<vmem>>, vector<1x16xf32>
    %cst_17 = arith.constant dense<0.000000e+00> : vector<8x16xf32>
    %18 = tpu.matmul %9, %10, %cst_17 {dimension_numbers = #tpu.dot_dimension_numbers<[1], [0], [0], [1], [0, 0, 1, 1], [], []>} : vector<8x16xf32>, vector<16x16xf32>, vector<8x16xf32> -> vector<8x16xf32>
    %19 = vector.broadcast %14 : vector<1x16xf32> to vector<8x16xf32>
    %20 = arith.addf %18, %19 : vector<8x16xf32>
    %cst_18 = arith.constant dense<0.000000e+00> : vector<8x16xf32>
    %21 = tpu.matmul %9, %11, %cst_18 {dimension_numbers = #tpu.dot_dimension_numbers<[1], [0], [0], [1], [0, 0, 1, 1], [], []>} : vector<8x16xf32>, vector<16x16xf32>, vector<8x16xf32> -> vector<8x16xf32>
    %22 = vector.broadcast %15 : vector<1x16xf32> to vector<8x16xf32>
    %23 = arith.addf %21, %22 : vector<8x16xf32>
    %cst_19 = arith.constant dense<0.000000e+00> : vector<8x16xf32>
    %24 = tpu.matmul %9, %12, %cst_19 {dimension_numbers = #tpu.dot_dimension_numbers<[1], [0], [0], [1], [0, 0, 1, 1], [], []>} : vector<8x16xf32>, vector<16x16xf32>, vector<8x16xf32> -> vector<8x16xf32>
    %25 = vector.broadcast %16 : vector<1x16xf32> to vector<8x16xf32>
    %26 = arith.addf %24, %25 : vector<8x16xf32>
    %27 = tpu.concatenate %20, %20, %20, %20 in 0 : vector<8x16xf32>, vector<8x16xf32>, vector<8x16xf32>, vector<8x16xf32> -> vector<32x16xf32>
    %28 = arith.mulf %27, %1 : vector<32x16xf32>
    %cst_20 = arith.constant dense<0.000000e+00> : vector<32x8xf32>
    %29 = tpu.matmul %28, %23, %cst_20 {dimension_numbers = #tpu.dot_dimension_numbers<[1], [1], [0], [0], [0, 0, 1, 0], [], []>} : vector<32x16xf32>, vector<8x16xf32>, vector<32x8xf32> -> vector<32x8xf32>
    %cst_21 = arith.constant 5.000000e-01 : f32
    %30 = vector.broadcast %cst_21 : f32 to vector<32x8xf32>
    %31 = arith.mulf %29, %30 : vector<32x8xf32>
    %32 = vector.broadcast %0 : vector<1x8xf32> to vector<32x8xf32>
    %33 = arith.addf %31, %32 : vector<32x8xf32>
    %cst_22 = arith.constant dense<0xFF800000> : vector<32xf32>
    %34 = vector.multi_reduction <maximumf>, %33, %cst_22 [1] : vector<32x8xf32> to vector<32xf32>
    %35 = vector.shape_cast %34 : vector<32xf32> to vector<32x1xf32>
    %36 = vector.broadcast %35 : vector<32x1xf32> to vector<32x8xf32>
    %37 = arith.subf %33, %36 : vector<32x8xf32>
    %38 = math.exp %37 : vector<32x8xf32>
    %cst_23 = arith.constant dense<0.000000e+00> : vector<32xf32>
    %39 = vector.multi_reduction <add>, %38, %cst_23 [1] : vector<32x8xf32> to vector<32xf32>
    %40 = vector.shape_cast %39 : vector<32xf32> to vector<32x1xf32>
    %41 = vector.broadcast %40 : vector<32x1xf32> to vector<32x8xf32>
    %42 = arith.divf %38, %41 : vector<32x8xf32>
    %cst_24 = arith.constant dense<0.000000e+00> : vector<32x16xf32>
    %43 = tpu.matmul %42, %26, %cst_24 {dimension_numbers = #tpu.dot_dimension_numbers<[1], [0], [0], [1], [0, 0, 1, 1], [], []>} : vector<32x8xf32>, vector<8x16xf32>, vector<32x16xf32> -> vector<32x16xf32>
    %44 = arith.mulf %43, %1 : vector<32x16xf32>
    %45 = vector.extract_strided_slice %44 {offsets = [0, 0], sizes = [8, 16], strides = [1, 1]} : vector<32x16xf32> to vector<8x16xf32>
    %46 = vector.extract_strided_slice %44 {offsets = [8, 0], sizes = [8, 16], strides = [1, 1]} : vector<32x16xf32> to vector<8x16xf32>
    %47 = arith.addf %45, %46 : vector<8x16xf32>
    %48 = vector.extract_strided_slice %44 {offsets = [16, 0], sizes = [8, 16], strides = [1, 1]} : vector<32x16xf32> to vector<8x16xf32>
    %49 = arith.addf %47, %48 : vector<8x16xf32>
    %50 = vector.extract_strided_slice %44 {offsets = [24, 0], sizes = [8, 16], strides = [1, 1]} : vector<32x16xf32> to vector<8x16xf32>
    %51 = arith.addf %49, %50 : vector<8x16xf32>
    %cst_25 = arith.constant dense<0.000000e+00> : vector<8x16xf32>
    %52 = tpu.matmul %51, %13, %cst_25 {dimension_numbers = #tpu.dot_dimension_numbers<[1], [0], [0], [1], [0, 0, 1, 1], [], []>} : vector<8x16xf32>, vector<16x16xf32>, vector<8x16xf32> -> vector<8x16xf32>
    %53 = vector.broadcast %17 : vector<1x16xf32> to vector<8x16xf32>
    %54 = arith.addf %52, %53 : vector<8x16xf32>
    %55 = arith.addf %9, %54 : vector<8x16xf32>
    %c68 = arith.constant 68 : index
    %c0_26 = arith.constant 0 : index
    %56 = vector.load %arg4[%c68, %c0_26] : memref<336x128xf32, #tpu.memory_space<vmem>>, vector<1x16xf32>
    %c69 = arith.constant 69 : index
    %c0_27 = arith.constant 0 : index
    %57 = vector.load %arg4[%c69, %c0_27] : memref<336x128xf32, #tpu.memory_space<vmem>>, vector<1x16xf32>
    %cst_28 = arith.constant dense<0.000000e+00> : vector<8xf32>
    %58 = vector.multi_reduction <add>, %55, %cst_28 [1] : vector<8x16xf32> to vector<8xf32>
    %59 = vector.shape_cast %58 : vector<8xf32> to vector<8x1xf32>
    %cst_29 = arith.constant 1.600000e+01 : f32
    %60 = vector.broadcast %cst_29 : f32 to vector<8x1xf32>
    %61 = arith.divf %59, %60 : vector<8x1xf32>
    %62 = vector.broadcast %61 : vector<8x1xf32> to vector<8x16xf32>
    %63 = arith.subf %55, %62 : vector<8x16xf32>
    %64 = arith.mulf %63, %63 : vector<8x16xf32>
    %cst_30 = arith.constant dense<0.000000e+00> : vector<8xf32>
    %65 = vector.multi_reduction <add>, %64, %cst_30 [1] : vector<8x16xf32> to vector<8xf32>
    %66 = vector.shape_cast %65 : vector<8xf32> to vector<8x1xf32>
    %cst_31 = arith.constant 1.600000e+01 : f32
    %67 = vector.broadcast %cst_31 : f32 to vector<8x1xf32>
    %68 = arith.divf %66, %67 : vector<8x1xf32>
    %69 = vector.broadcast %61 : vector<8x1xf32> to vector<8x16xf32>
    %70 = arith.subf %55, %69 : vector<8x16xf32>
    %cst_32 = arith.constant 9.99999974E-6 : f32
    %71 = vector.broadcast %cst_32 : f32 to vector<8x1xf32>
    %72 = arith.addf %68, %71 : vector<8x1xf32>
    %73 = math.rsqrt %72 : vector<8x1xf32>
    %74 = vector.broadcast %73 : vector<8x1xf32> to vector<8x16xf32>
    %75 = arith.mulf %70, %74 : vector<8x16xf32>
    %76 = vector.broadcast %56 : vector<1x16xf32> to vector<8x16xf32>
    %77 = arith.mulf %75, %76 : vector<8x16xf32>
    %78 = vector.broadcast %57 : vector<1x16xf32> to vector<8x16xf32>
    %79 = arith.addf %77, %78 : vector<8x16xf32>
    %c72 = arith.constant 72 : index
    %c0_33 = arith.constant 0 : index
    %80 = vector.load %arg4[%c72, %c0_33] : memref<336x128xf32, #tpu.memory_space<vmem>>, vector<16x64xf32>
    %c88 = arith.constant 88 : index
    %c0_34 = arith.constant 0 : index
    %81 = vector.load %arg4[%c88, %c0_34] : memref<336x128xf32, #tpu.memory_space<vmem>>, vector<1x64xf32>
    %c96 = arith.constant 96 : index
    %c0_35 = arith.constant 0 : index
    %82 = vector.load %arg4[%c96, %c0_35] : memref<336x128xf32, #tpu.memory_space<vmem>>, vector<64x16xf32>
    %c160 = arith.constant 160 : index
    %c0_36 = arith.constant 0 : index
    %83 = vector.load %arg4[%c160, %c0_36] : memref<336x128xf32, #tpu.memory_space<vmem>>, vector<1x16xf32>
    %cst_37 = arith.constant dense<0.000000e+00> : vector<8x64xf32>
    %84 = tpu.matmul %79, %80, %cst_37 {dimension_numbers = #tpu.dot_dimension_numbers<[1], [0], [0], [1], [0, 0, 1, 1], [], []>} : vector<8x16xf32>, vector<16x64xf32>, vector<8x64xf32> -> vector<8x64xf32>
    %85 = vector.broadcast %81 : vector<1x64xf32> to vector<8x64xf32>
    %86 = arith.addf %84, %85 : vector<8x64xf32>
    %cst_38 = arith.constant 0.000000e+00 : f32
    %87 = vector.broadcast %cst_38 : f32 to vector<8x64xf32>
    %88 = arith.maximumf %86, %87 : vector<8x64xf32>
    %cst_39 = arith.constant dense<0.000000e+00> : vector<8x16xf32>
    %89 = tpu.matmul %88, %82, %cst_39 {dimension_numbers = #tpu.dot_dimension_numbers<[1], [0], [0], [1], [0, 0, 1, 1], [], []>} : vector<8x64xf32>, vector<64x16xf32>, vector<8x16xf32> -> vector<8x16xf32>
    %90 = vector.broadcast %83 : vector<1x16xf32> to vector<8x16xf32>
    %91 = arith.addf %89, %90 : vector<8x16xf32>
    %92 = arith.addf %79, %91 : vector<8x16xf32>
    %c70 = arith.constant 70 : index
    %c0_40 = arith.constant 0 : index
    %93 = vector.load %arg4[%c70, %c0_40] : memref<336x128xf32, #tpu.memory_space<vmem>>, vector<1x16xf32>
    %c71 = arith.constant 71 : index
    %c0_41 = arith.constant 0 : index
    %94 = vector.load %arg4[%c71, %c0_41] : memref<336x128xf32, #tpu.memory_space<vmem>>, vector<1x16xf32>
    %cst_42 = arith.constant dense<0.000000e+00> : vector<8xf32>
    %95 = vector.multi_reduction <add>, %92, %cst_42 [1] : vector<8x16xf32> to vector<8xf32>
    %96 = vector.shape_cast %95 : vector<8xf32> to vector<8x1xf32>
    %cst_43 = arith.constant 1.600000e+01 : f32
    %97 = vector.broadcast %cst_43 : f32 to vector<8x1xf32>
    %98 = arith.divf %96, %97 : vector<8x1xf32>
    %99 = vector.broadcast %98 : vector<8x1xf32> to vector<8x16xf32>
    %100 = arith.subf %92, %99 : vector<8x16xf32>
    %101 = arith.mulf %100, %100 : vector<8x16xf32>
    %cst_44 = arith.constant dense<0.000000e+00> : vector<8xf32>
    %102 = vector.multi_reduction <add>, %101, %cst_44 [1] : vector<8x16xf32> to vector<8xf32>
    %103 = vector.shape_cast %102 : vector<8xf32> to vector<8x1xf32>
    %cst_45 = arith.constant 1.600000e+01 : f32
    %104 = vector.broadcast %cst_45 : f32 to vector<8x1xf32>
    %105 = arith.divf %103, %104 : vector<8x1xf32>
    %106 = vector.broadcast %98 : vector<8x1xf32> to vector<8x16xf32>
    %107 = arith.subf %92, %106 : vector<8x16xf32>
    %cst_46 = arith.constant 9.99999974E-6 : f32
    %108 = vector.broadcast %cst_46 : f32 to vector<8x1xf32>
    %109 = arith.addf %105, %108 : vector<8x1xf32>
    %110 = math.rsqrt %109 : vector<8x1xf32>
    %111 = vector.broadcast %110 : vector<8x1xf32> to vector<8x16xf32>
    %112 = arith.mulf %107, %111 : vector<8x16xf32>
    %113 = vector.broadcast %93 : vector<1x16xf32> to vector<8x16xf32>
    %114 = arith.mulf %112, %113 : vector<8x16xf32>
    %115 = vector.broadcast %94 : vector<1x16xf32> to vector<8x16xf32>
    %116 = arith.addf %114, %115 : vector<8x16xf32>
    %c168 = arith.constant 168 : index
    %c0_47 = arith.constant 0 : index
    %117 = vector.load %arg4[%c168, %c0_47] : memref<336x128xf32, #tpu.memory_space<vmem>>, vector<16x16xf32>
    %c184 = arith.constant 184 : index
    %c0_48 = arith.constant 0 : index
    %118 = vector.load %arg4[%c184, %c0_48] : memref<336x128xf32, #tpu.memory_space<vmem>>, vector<16x16xf32>
    %c200 = arith.constant 200 : index
    %c0_49 = arith.constant 0 : index
    %119 = vector.load %arg4[%c200, %c0_49] : memref<336x128xf32, #tpu.memory_space<vmem>>, vector<16x16xf32>
    %c216 = arith.constant 216 : index
    %c0_50 = arith.constant 0 : index
    %120 = vector.load %arg4[%c216, %c0_50] : memref<336x128xf32, #tpu.memory_space<vmem>>, vector<16x16xf32>
    %c232 = arith.constant 232 : index
    %c0_51 = arith.constant 0 : index
    %121 = vector.load %arg4[%c232, %c0_51] : memref<336x128xf32, #tpu.memory_space<vmem>>, vector<1x16xf32>
    %c233 = arith.constant 233 : index
    %c0_52 = arith.constant 0 : index
    %122 = vector.load %arg4[%c233, %c0_52] : memref<336x128xf32, #tpu.memory_space<vmem>>, vector<1x16xf32>
    %c234 = arith.constant 234 : index
    %c0_53 = arith.constant 0 : index
    %123 = vector.load %arg4[%c234, %c0_53] : memref<336x128xf32, #tpu.memory_space<vmem>>, vector<1x16xf32>
    %c235 = arith.constant 235 : index
    %c0_54 = arith.constant 0 : index
    %124 = vector.load %arg4[%c235, %c0_54] : memref<336x128xf32, #tpu.memory_space<vmem>>, vector<1x16xf32>
    %cst_55 = arith.constant dense<0.000000e+00> : vector<8x16xf32>
    %125 = tpu.matmul %116, %117, %cst_55 {dimension_numbers = #tpu.dot_dimension_numbers<[1], [0], [0], [1], [0, 0, 1, 1], [], []>} : vector<8x16xf32>, vector<16x16xf32>, vector<8x16xf32> -> vector<8x16xf32>
    %126 = vector.broadcast %121 : vector<1x16xf32> to vector<8x16xf32>
    %127 = arith.addf %125, %126 : vector<8x16xf32>
    %cst_56 = arith.constant dense<0.000000e+00> : vector<8x16xf32>
    %128 = tpu.matmul %116, %118, %cst_56 {dimension_numbers = #tpu.dot_dimension_numbers<[1], [0], [0], [1], [0, 0, 1, 1], [], []>} : vector<8x16xf32>, vector<16x16xf32>, vector<8x16xf32> -> vector<8x16xf32>
    %129 = vector.broadcast %122 : vector<1x16xf32> to vector<8x16xf32>
    %130 = arith.addf %128, %129 : vector<8x16xf32>
    %cst_57 = arith.constant dense<0.000000e+00> : vector<8x16xf32>
    %131 = tpu.matmul %116, %119, %cst_57 {dimension_numbers = #tpu.dot_dimension_numbers<[1], [0], [0], [1], [0, 0, 1, 1], [], []>} : vector<8x16xf32>, vector<16x16xf32>, vector<8x16xf32> -> vector<8x16xf32>
    %132 = vector.broadcast %123 : vector<1x16xf32> to vector<8x16xf32>
    %133 = arith.addf %131, %132 : vector<8x16xf32>
    %134 = tpu.concatenate %127, %127, %127, %127 in 0 : vector<8x16xf32>, vector<8x16xf32>, vector<8x16xf32>, vector<8x16xf32> -> vector<32x16xf32>
    %135 = arith.mulf %134, %1 : vector<32x16xf32>
    %cst_58 = arith.constant dense<0.000000e+00> : vector<32x8xf32>
    %136 = tpu.matmul %135, %130, %cst_58 {dimension_numbers = #tpu.dot_dimension_numbers<[1], [1], [0], [0], [0, 0, 1, 0], [], []>} : vector<32x16xf32>, vector<8x16xf32>, vector<32x8xf32> -> vector<32x8xf32>
    %cst_59 = arith.constant 5.000000e-01 : f32
    %137 = vector.broadcast %cst_59 : f32 to vector<32x8xf32>
    %138 = arith.mulf %136, %137 : vector<32x8xf32>
    %139 = vector.broadcast %0 : vector<1x8xf32> to vector<32x8xf32>
    %140 = arith.addf %138, %139 : vector<32x8xf32>
    %cst_60 = arith.constant dense<0xFF800000> : vector<32xf32>
    %141 = vector.multi_reduction <maximumf>, %140, %cst_60 [1] : vector<32x8xf32> to vector<32xf32>
    %142 = vector.shape_cast %141 : vector<32xf32> to vector<32x1xf32>
    %143 = vector.broadcast %142 : vector<32x1xf32> to vector<32x8xf32>
    %144 = arith.subf %140, %143 : vector<32x8xf32>
    %145 = math.exp %144 : vector<32x8xf32>
    %cst_61 = arith.constant dense<0.000000e+00> : vector<32xf32>
    %146 = vector.multi_reduction <add>, %145, %cst_61 [1] : vector<32x8xf32> to vector<32xf32>
    %147 = vector.shape_cast %146 : vector<32xf32> to vector<32x1xf32>
    %148 = vector.broadcast %147 : vector<32x1xf32> to vector<32x8xf32>
    %149 = arith.divf %145, %148 : vector<32x8xf32>
    %cst_62 = arith.constant dense<0.000000e+00> : vector<32x16xf32>
    %150 = tpu.matmul %149, %133, %cst_62 {dimension_numbers = #tpu.dot_dimension_numbers<[1], [0], [0], [1], [0, 0, 1, 1], [], []>} : vector<32x8xf32>, vector<8x16xf32>, vector<32x16xf32> -> vector<32x16xf32>
    %151 = arith.mulf %150, %1 : vector<32x16xf32>
    %152 = vector.extract_strided_slice %151 {offsets = [0, 0], sizes = [8, 16], strides = [1, 1]} : vector<32x16xf32> to vector<8x16xf32>
    %153 = vector.extract_strided_slice %151 {offsets = [8, 0], sizes = [8, 16], strides = [1, 1]} : vector<32x16xf32> to vector<8x16xf32>
    %154 = arith.addf %152, %153 : vector<8x16xf32>
    %155 = vector.extract_strided_slice %151 {offsets = [16, 0], sizes = [8, 16], strides = [1, 1]} : vector<32x16xf32> to vector<8x16xf32>
    %156 = arith.addf %154, %155 : vector<8x16xf32>
    %157 = vector.extract_strided_slice %151 {offsets = [24, 0], sizes = [8, 16], strides = [1, 1]} : vector<32x16xf32> to vector<8x16xf32>
    %158 = arith.addf %156, %157 : vector<8x16xf32>
    %cst_63 = arith.constant dense<0.000000e+00> : vector<8x16xf32>
    %159 = tpu.matmul %158, %120, %cst_63 {dimension_numbers = #tpu.dot_dimension_numbers<[1], [0], [0], [1], [0, 0, 1, 1], [], []>} : vector<8x16xf32>, vector<16x16xf32>, vector<8x16xf32> -> vector<8x16xf32>
    %160 = vector.broadcast %124 : vector<1x16xf32> to vector<8x16xf32>
    %161 = arith.addf %159, %160 : vector<8x16xf32>
    %162 = arith.addf %116, %161 : vector<8x16xf32>
    %c236 = arith.constant 236 : index
    %c0_64 = arith.constant 0 : index
    %163 = vector.load %arg4[%c236, %c0_64] : memref<336x128xf32, #tpu.memory_space<vmem>>, vector<1x16xf32>
    %c237 = arith.constant 237 : index
    %c0_65 = arith.constant 0 : index
    %164 = vector.load %arg4[%c237, %c0_65] : memref<336x128xf32, #tpu.memory_space<vmem>>, vector<1x16xf32>
    %cst_66 = arith.constant dense<0.000000e+00> : vector<8xf32>
    %165 = vector.multi_reduction <add>, %162, %cst_66 [1] : vector<8x16xf32> to vector<8xf32>
    %166 = vector.shape_cast %165 : vector<8xf32> to vector<8x1xf32>
    %cst_67 = arith.constant 1.600000e+01 : f32
    %167 = vector.broadcast %cst_67 : f32 to vector<8x1xf32>
    %168 = arith.divf %166, %167 : vector<8x1xf32>
    %169 = vector.broadcast %168 : vector<8x1xf32> to vector<8x16xf32>
    %170 = arith.subf %162, %169 : vector<8x16xf32>
    %171 = arith.mulf %170, %170 : vector<8x16xf32>
    %cst_68 = arith.constant dense<0.000000e+00> : vector<8xf32>
    %172 = vector.multi_reduction <add>, %171, %cst_68 [1] : vector<8x16xf32> to vector<8xf32>
    %173 = vector.shape_cast %172 : vector<8xf32> to vector<8x1xf32>
    %cst_69 = arith.constant 1.600000e+01 : f32
    %174 = vector.broadcast %cst_69 : f32 to vector<8x1xf32>
    %175 = arith.divf %173, %174 : vector<8x1xf32>
    %176 = vector.broadcast %168 : vector<8x1xf32> to vector<8x16xf32>
    %177 = arith.subf %162, %176 : vector<8x16xf32>
    %cst_70 = arith.constant 9.99999974E-6 : f32
    %178 = vector.broadcast %cst_70 : f32 to vector<8x1xf32>
    %179 = arith.addf %175, %178 : vector<8x1xf32>
    %180 = math.rsqrt %179 : vector<8x1xf32>
    %181 = vector.broadcast %180 : vector<8x1xf32> to vector<8x16xf32>
    %182 = arith.mulf %177, %181 : vector<8x16xf32>
    %183 = vector.broadcast %163 : vector<1x16xf32> to vector<8x16xf32>
    %184 = arith.mulf %182, %183 : vector<8x16xf32>
    %185 = vector.broadcast %164 : vector<1x16xf32> to vector<8x16xf32>
    %186 = arith.addf %184, %185 : vector<8x16xf32>
    %c240 = arith.constant 240 : index
    %c0_71 = arith.constant 0 : index
    %187 = vector.load %arg4[%c240, %c0_71] : memref<336x128xf32, #tpu.memory_space<vmem>>, vector<16x64xf32>
    %c256 = arith.constant 256 : index
    %c0_72 = arith.constant 0 : index
    %188 = vector.load %arg4[%c256, %c0_72] : memref<336x128xf32, #tpu.memory_space<vmem>>, vector<1x64xf32>
    %c264 = arith.constant 264 : index
    %c0_73 = arith.constant 0 : index
    %189 = vector.load %arg4[%c264, %c0_73] : memref<336x128xf32, #tpu.memory_space<vmem>>, vector<64x16xf32>
    %c328 = arith.constant 328 : index
    %c0_74 = arith.constant 0 : index
    %190 = vector.load %arg4[%c328, %c0_74] : memref<336x128xf32, #tpu.memory_space<vmem>>, vector<1x16xf32>
    %cst_75 = arith.constant dense<0.000000e+00> : vector<8x64xf32>
    %191 = tpu.matmul %186, %187, %cst_75 {dimension_numbers = #tpu.dot_dimension_numbers<[1], [0], [0], [1], [0, 0, 1, 1], [], []>} : vector<8x16xf32>, vector<16x64xf32>, vector<8x64xf32> -> vector<8x64xf32>
    %192 = vector.broadcast %188 : vector<1x64xf32> to vector<8x64xf32>
    %193 = arith.addf %191, %192 : vector<8x64xf32>
    %cst_76 = arith.constant 0.000000e+00 : f32
    %194 = vector.broadcast %cst_76 : f32 to vector<8x64xf32>
    %195 = arith.maximumf %193, %194 : vector<8x64xf32>
    %cst_77 = arith.constant dense<0.000000e+00> : vector<8x16xf32>
    %196 = tpu.matmul %195, %189, %cst_77 {dimension_numbers = #tpu.dot_dimension_numbers<[1], [0], [0], [1], [0, 0, 1, 1], [], []>} : vector<8x64xf32>, vector<64x16xf32>, vector<8x16xf32> -> vector<8x16xf32>
    %197 = vector.broadcast %190 : vector<1x16xf32> to vector<8x16xf32>
    %198 = arith.addf %196, %197 : vector<8x16xf32>
    %199 = arith.addf %186, %198 : vector<8x16xf32>
    %c238 = arith.constant 238 : index
    %c0_78 = arith.constant 0 : index
    %200 = vector.load %arg4[%c238, %c0_78] : memref<336x128xf32, #tpu.memory_space<vmem>>, vector<1x16xf32>
    %c239 = arith.constant 239 : index
    %c0_79 = arith.constant 0 : index
    %201 = vector.load %arg4[%c239, %c0_79] : memref<336x128xf32, #tpu.memory_space<vmem>>, vector<1x16xf32>
    %cst_80 = arith.constant dense<0.000000e+00> : vector<8xf32>
    %202 = vector.multi_reduction <add>, %199, %cst_80 [1] : vector<8x16xf32> to vector<8xf32>
    %203 = vector.shape_cast %202 : vector<8xf32> to vector<8x1xf32>
    %cst_81 = arith.constant 1.600000e+01 : f32
    %204 = vector.broadcast %cst_81 : f32 to vector<8x1xf32>
    %205 = arith.divf %203, %204 : vector<8x1xf32>
    %206 = vector.broadcast %205 : vector<8x1xf32> to vector<8x16xf32>
    %207 = arith.subf %199, %206 : vector<8x16xf32>
    %208 = arith.mulf %207, %207 : vector<8x16xf32>
    %cst_82 = arith.constant dense<0.000000e+00> : vector<8xf32>
    %209 = vector.multi_reduction <add>, %208, %cst_82 [1] : vector<8x16xf32> to vector<8xf32>
    %210 = vector.shape_cast %209 : vector<8xf32> to vector<8x1xf32>
    %cst_83 = arith.constant 1.600000e+01 : f32
    %211 = vector.broadcast %cst_83 : f32 to vector<8x1xf32>
    %212 = arith.divf %210, %211 : vector<8x1xf32>
    %213 = vector.broadcast %205 : vector<8x1xf32> to vector<8x16xf32>
    %214 = arith.subf %199, %213 : vector<8x16xf32>
    %cst_84 = arith.constant 9.99999974E-6 : f32
    %215 = vector.broadcast %cst_84 : f32 to vector<8x1xf32>
    %216 = arith.addf %212, %215 : vector<8x1xf32>
    %217 = math.rsqrt %216 : vector<8x1xf32>
    %218 = vector.broadcast %217 : vector<8x1xf32> to vector<8x16xf32>
    %219 = arith.mulf %214, %218 : vector<8x16xf32>
    %220 = vector.broadcast %200 : vector<1x16xf32> to vector<8x16xf32>
    %221 = arith.mulf %219, %220 : vector<8x16xf32>
    %222 = vector.broadcast %201 : vector<1x16xf32> to vector<8x16xf32>
    %223 = arith.addf %221, %222 : vector<8x16xf32>
    %cst_85 = arith.constant dense<0.000000e+00> : vector<16xf32>
    %224 = vector.multi_reduction <add>, %223, %cst_85 [0] : vector<8x16xf32> to vector<16xf32>
    %225 = vector.shape_cast %224 : vector<16xf32> to vector<1x16xf32>
    %cst_86 = arith.constant 8.000000e+00 : f32
    %226 = vector.broadcast %cst_86 : f32 to vector<1x16xf32>
    %227 = arith.divf %225, %226 : vector<1x16xf32>
    %c16_87 = arith.constant 16 : index
    %c0_88 = arith.constant 0 : index
    %228 = vector.load %arg5[%c16_87, %c0_88] : memref<432x128xf32, #tpu.memory_space<vmem>>, vector<16x4xf32>
    %cst_89 = arith.constant dense<0.000000e+00> : vector<1x4xf32>
    %229 = tpu.matmul %227, %228, %cst_89 {dimension_numbers = #tpu.dot_dimension_numbers<[1], [0], [0], [1], [0, 0, 1, 1], [], []>} : vector<1x16xf32>, vector<16x4xf32>, vector<1x4xf32> -> vector<1x4xf32>
    %c32_90 = arith.constant 32 : index
    %c0_91 = arith.constant 0 : index
    %230 = vector.load %arg5[%c32_90, %c0_91] : memref<432x128xf32, #tpu.memory_space<vmem>>, vector<1x4xf32>
    %231 = arith.addf %229, %230 : vector<1x4xf32>
    %c0_92 = arith.constant 0 : index
    %c0_93 = arith.constant 0 : index
    %232 = vector.load %arg2[%c0_92, %c0_93] : memref<1x15xf32, #tpu.memory_space<vmem>>, vector<1x15xf32>
    %c40 = arith.constant 40 : index
    %c0_94 = arith.constant 0 : index
    %233 = vector.load %arg5[%c40, %c0_94] : memref<432x128xf32, #tpu.memory_space<vmem>>, vector<15x64xf32>
    %cst_95 = arith.constant dense<0.000000e+00> : vector<1x64xf32>
    %234 = tpu.matmul %232, %233, %cst_95 {dimension_numbers = #tpu.dot_dimension_numbers<[1], [0], [0], [1], [0, 0, 1, 1], [], []>} : vector<1x15xf32>, vector<15x64xf32>, vector<1x64xf32> -> vector<1x64xf32>
    %c56 = arith.constant 56 : index
    %c0_96 = arith.constant 0 : index
    %235 = vector.load %arg5[%c56, %c0_96] : memref<432x128xf32, #tpu.memory_space<vmem>>, vector<4x64xf32>
    %cst_97 = arith.constant dense<0.000000e+00> : vector<1x64xf32>
    %236 = tpu.matmul %231, %235, %cst_97 {dimension_numbers = #tpu.dot_dimension_numbers<[1], [0], [0], [1], [0, 0, 1, 1], [], []>} : vector<1x4xf32>, vector<4x64xf32>, vector<1x64xf32> -> vector<1x64xf32>
    %237 = arith.addf %234, %236 : vector<1x64xf32>
    %c60 = arith.constant 60 : index
    %c0_98 = arith.constant 0 : index
    %238 = vector.load %arg5[%c60, %c0_98] : memref<432x128xf32, #tpu.memory_space<vmem>>, vector<1x64xf32>
    %239 = arith.addf %237, %238 : vector<1x64xf32>
    %cst_99 = arith.constant 0.000000e+00 : f32
    %240 = vector.broadcast %cst_99 : f32 to vector<1x64xf32>
    %241 = arith.maximumf %239, %240 : vector<1x64xf32>
    %c64_100 = arith.constant 64 : index
    %c0_101 = arith.constant 0 : index
    %242 = vector.load %arg5[%c64_100, %c0_101] : memref<432x128xf32, #tpu.memory_space<vmem>>, vector<64x24xf32>
    %cst_102 = arith.constant dense<0.000000e+00> : vector<1x24xf32>
    %243 = tpu.matmul %241, %242, %cst_102 {dimension_numbers = #tpu.dot_dimension_numbers<[1], [0], [0], [1], [0, 0, 1, 1], [], []>} : vector<1x64xf32>, vector<64x24xf32>, vector<1x24xf32> -> vector<1x24xf32>
    %c256_103 = arith.constant 256 : index
    %c0_104 = arith.constant 0 : index
    %244 = vector.load %arg5[%c256_103, %c0_104] : memref<432x128xf32, #tpu.memory_space<vmem>>, vector<1x24xf32>
    %245 = arith.addf %243, %244 : vector<1x24xf32>
    %c128 = arith.constant 128 : index
    %c0_105 = arith.constant 0 : index
    %246 = vector.load %arg5[%c128, %c0_105] : memref<432x128xf32, #tpu.memory_space<vmem>>, vector<64x64xf32>
    %cst_106 = arith.constant dense<0.000000e+00> : vector<1x64xf32>
    %247 = tpu.matmul %241, %246, %cst_106 {dimension_numbers = #tpu.dot_dimension_numbers<[1], [0], [0], [1], [0, 0, 1, 1], [], []>} : vector<1x64xf32>, vector<64x64xf32>, vector<1x64xf32> -> vector<1x64xf32>
    %c257 = arith.constant 257 : index
    %c0_107 = arith.constant 0 : index
    %248 = vector.load %arg5[%c257, %c0_107] : memref<432x128xf32, #tpu.memory_space<vmem>>, vector<1x64xf32>
    %249 = arith.addf %247, %248 : vector<1x64xf32>
    %c192 = arith.constant 192 : index
    %c0_108 = arith.constant 0 : index
    %250 = vector.load %arg5[%c192, %c0_108] : memref<432x128xf32, #tpu.memory_space<vmem>>, vector<64x24xf32>
    %cst_109 = arith.constant dense<0.000000e+00> : vector<1x24xf32>
    %251 = tpu.matmul %241, %250, %cst_109 {dimension_numbers = #tpu.dot_dimension_numbers<[1], [0], [0], [1], [0, 0, 1, 1], [], []>} : vector<1x64xf32>, vector<64x24xf32>, vector<1x24xf32> -> vector<1x24xf32>
    %c258 = arith.constant 258 : index
    %c0_110 = arith.constant 0 : index
    %252 = vector.load %arg5[%c258, %c0_110] : memref<432x128xf32, #tpu.memory_space<vmem>>, vector<1x24xf32>
    %253 = arith.addf %251, %252 : vector<1x24xf32>
    %c0_111 = arith.constant 0 : index
    %c0_112 = arith.constant 0 : index
    %254 = vector.load %arg3[%c0_111, %c0_112] : memref<1x3xf32, #tpu.memory_space<vmem>>, vector<1x3xf32>
    %c264_113 = arith.constant 264 : index
    %c0_114 = arith.constant 0 : index
    %255 = vector.load %arg5[%c264_113, %c0_114] : memref<432x128xf32, #tpu.memory_space<vmem>>, vector<3x24xf32>
    %c272 = arith.constant 272 : index
    %c0_115 = arith.constant 0 : index
    %256 = vector.load %arg5[%c272, %c0_115] : memref<432x128xf32, #tpu.memory_space<vmem>>, vector<24x8xf32>
    %cst_116 = arith.constant dense<0.000000e+00> : vector<1x24xf32>
    %257 = tpu.matmul %254, %255, %cst_116 {dimension_numbers = #tpu.dot_dimension_numbers<[1], [0], [0], [1], [0, 0, 1, 1], [], []>} : vector<1x3xf32>, vector<3x24xf32>, vector<1x24xf32> -> vector<1x24xf32>
    %258 = arith.mulf %257, %245 : vector<1x24xf32>
    %cst_117 = arith.constant dense<0.000000e+00> : vector<1x8xf32>
    %259 = tpu.matmul %258, %256, %cst_117 {dimension_numbers = #tpu.dot_dimension_numbers<[1], [0], [0], [1], [0, 0, 1, 1], [], []>} : vector<1x24xf32>, vector<24x8xf32>, vector<1x8xf32> -> vector<1x8xf32>
    %cst_118 = arith.constant 0.000000e+00 : f32
    %260 = vector.broadcast %cst_118 : f32 to vector<1x8xf32>
    %261 = arith.maximumf %259, %260 : vector<1x8xf32>
    %c296 = arith.constant 296 : index
    %c0_119 = arith.constant 0 : index
    %262 = vector.load %arg5[%c296, %c0_119] : memref<432x128xf32, #tpu.memory_space<vmem>>, vector<8x64xf32>
    %c304 = arith.constant 304 : index
    %c0_120 = arith.constant 0 : index
    %263 = vector.load %arg5[%c304, %c0_120] : memref<432x128xf32, #tpu.memory_space<vmem>>, vector<64x8xf32>
    %cst_121 = arith.constant dense<0.000000e+00> : vector<1x64xf32>
    %264 = tpu.matmul %261, %262, %cst_121 {dimension_numbers = #tpu.dot_dimension_numbers<[1], [0], [0], [1], [0, 0, 1, 1], [], []>} : vector<1x8xf32>, vector<8x64xf32>, vector<1x64xf32> -> vector<1x64xf32>
    %265 = arith.mulf %264, %249 : vector<1x64xf32>
    %cst_122 = arith.constant dense<0.000000e+00> : vector<1x8xf32>
    %266 = tpu.matmul %265, %263, %cst_122 {dimension_numbers = #tpu.dot_dimension_numbers<[1], [0], [0], [1], [0, 0, 1, 1], [], []>} : vector<1x64xf32>, vector<64x8xf32>, vector<1x8xf32> -> vector<1x8xf32>
    %cst_123 = arith.constant 0.000000e+00 : f32
    %267 = vector.broadcast %cst_123 : f32 to vector<1x8xf32>
    %268 = arith.maximumf %266, %267 : vector<1x8xf32>
    %c368 = arith.constant 368 : index
    %c0_124 = arith.constant 0 : index
    %269 = vector.load %arg5[%c368, %c0_124] : memref<432x128xf32, #tpu.memory_space<vmem>>, vector<8x24xf32>
    %c376 = arith.constant 376 : index
    %c0_125 = arith.constant 0 : index
    %270 = vector.load %arg5[%c376, %c0_125] : memref<432x128xf32, #tpu.memory_space<vmem>>, vector<24x128xf32>
    %cst_126 = arith.constant dense<0.000000e+00> : vector<1x24xf32>
    %271 = tpu.matmul %268, %269, %cst_126 {dimension_numbers = #tpu.dot_dimension_numbers<[1], [0], [0], [1], [0, 0, 1, 1], [], []>} : vector<1x8xf32>, vector<8x24xf32>, vector<1x24xf32> -> vector<1x24xf32>
    %272 = arith.mulf %271, %253 : vector<1x24xf32>
    %cst_127 = arith.constant dense<0.000000e+00> : vector<1x128xf32>
    %273 = tpu.matmul %272, %270, %cst_127 {dimension_numbers = #tpu.dot_dimension_numbers<[1], [0], [0], [1], [0, 0, 1, 1], [], []>} : vector<1x24xf32>, vector<24x128xf32>, vector<1x128xf32> -> vector<1x128xf32>
    %274 = tpu.iota {dimensions = array<i32: 1>} : vector<1x128xi32>
    %cst_128 = arith.constant 0.000000e+00 : f32
    %275 = vector.broadcast %cst_128 : f32 to vector<1x128xf32>
    %276 = arith.subf %275, %273 : vector<1x128xf32>
    %277 = math.exp %276 : vector<1x128xf32>
    %cst_129 = arith.constant 1.000000e+00 : f32
    %278 = vector.broadcast %cst_129 : f32 to vector<1x128xf32>
    %279 = arith.addf %278, %277 : vector<1x128xf32>
    %cst_130 = arith.constant 1.000000e+00 : f32
    %280 = vector.broadcast %cst_130 : f32 to vector<1x128xf32>
    %281 = arith.divf %280, %279 : vector<1x128xf32>
    %c1_i32 = arith.constant 1 : i32
    %282 = vector.broadcast %c1_i32 : i32 to vector<1x128xi32>
    %283 = arith.cmpi eq, %274, %282 : vector<1x128xi32>
    %284 = math.tanh %273 : vector<1x128xf32>
    %285 = arith.select %283, %284, %281 : vector<1x128xi1>, vector<1x128xf32>
    %c0_131 = arith.constant 0 : index
    %c0_132 = arith.constant 0 : index
    %286 = vector.load %arg6[%c0_131, %c0_132] : memref<1x128xf32, #tpu.memory_space<vmem>>, vector<1x128xf32>
    tpu.vector_store %arg6[%c0_131, %c0_132], %285 {strides = array<i32>} : memref<1x128xf32, #tpu.memory_space<vmem>>, vector<1x128xf32>,
    return
  }
}

</mosaic_0001>

<bundles_post_ra>
// kernel: mvadapt_forward.1
= control target key start
LH: loop header
LB: loop body
LE: loop exit
PB: predicated region body
PF: predicated region fallthrough
CT: control target
= control target key end

     0   :  { %11 = vsyncpa [#allocation3], 0  ;;  %s3736_s0 = inlined_call_operand.vmem [shape: f32[8,3], index: 0, kind: input, shape index: {}]   ;;  %s3737_s1 = inlined_call_operand.vmem [shape: f32[1,8], index: 1, kind: input, shape index: {}]   ;;  %s3738_s2 = inlined_call_operand.vmem [shape: f32[1,15], index: 2, kind: input, shape index: {}]   ;;  %s3739_s3 = inlined_call_operand.vmem [shape: f32[1,3], index: 3, kind: input, shape index: {}]   ;;  %s3740_s4 = inlined_call_operand.hbm [shape: f32[336,128], index: 4, kind: input, shape index: {}]   ;;  %s3741_s5 = inlined_call_operand.hbm [shape: f32[432,128], index: 5, kind: input, shape index: {}]   ;;  %s3742_s6 = inlined_call_operand.hbm [shape: f32[1,128], index: 6, kind: output, shape index: {}]  }
   0x1   :  { %12 = vsyncpa [#allocation6], 0 }
   0x2   :  { %13 = vsyncpa [#allocation4], 0  ;;  %s3433_s21 = smov [#allocation2]   ;;  %s3361_s25 = scalar_lea.hbm %s3740_s4, 5376 }
   0x3   :  { %s27_s22 = sshll.u32 %s3433_s21, 4  ;;  %p3362_p0 = scmp.ne.s32.totalorder %s3740_s4, %s3361_s25  ;;  %s28_s22 = int_to_ptr.vmem [resolvable:$true] %s27_s22 }
   0x4   :  { %p3365_p1 = scmp.lt.u32.totalorder %s3361_s25, %s3740_s4 }
   0x6   :  { %p3367_p2 = pnand %p3365_p1, %p3362_p0 }
   0x8   :  { %3370 = shalt.err (!%p3367_p2)
}
   0x9   :  { %s3371_s30 = scalar_lea.vmem %s28_s22, 5376  ;;  %p3376_p4 = scmp.lt.s32.totalorder %s28_s22, %s28_s22 }
   0xa   :  { %p3372_p3 = scmp.ne.s32.totalorder %s28_s22, %s3371_s30  ;;  %p3377_p5 = scmp.lt.s32.totalorder %s3371_s30, %s3371_s30 }
   0xc   :  { %p3378_p6 = por %p3377_p5, %p3376_p4 }
   0xe   :  { %p3379_p7 = pnand %p3378_p6, %p3372_p3 }
  0x10   :  { %3382 = shalt.err (!%p3379_p7)
}
  0x11   :  { %s3434_s7 = smov 128   ;;  %s3435_s8 = smov 8  }
  0x12   :  { %33 = dma.hbm_to_vmem [thread:$0]  %s3740_s4, 5376, %s28_s22, [#allocation3], %s3434_s7, %s3434_s7, %s3435_s8  }
  0x13   :  { %s3436_s11 = smov [#allocation5]   ;;  %s3383_s15 = scalar_lea.hbm %s3741_s5, 6912 }
  0x14   :  { %s39_s12 = sshll.u32 %s3436_s11, 4  ;;  %p3384_p8 = scmp.ne.s32.totalorder %s3741_s5, %s3383_s15  ;;  %s40_s12 = int_to_ptr.vmem [resolvable:$true] %s39_s12 }
  0x15   :  { %p3387_p9 = scmp.lt.u32.totalorder %s3383_s15, %s3741_s5 }
  0x17   :  { %p3389_p10 = pnand %p3387_p9, %p3384_p8 }
  0x19   :  { %3392 = shalt.err (!%p3389_p10)
}
  0x1a   :  { %s3393_s20 = scalar_lea.vmem %s40_s12, 6912  ;;  %p3398_p12 = scmp.lt.s32.totalorder %s40_s12, %s40_s12 }
  0x1b   :  { %p3394_p11 = scmp.ne.s32.totalorder %s40_s12, %s3393_s20  ;;  %p3399_p13 = scmp.lt.s32.totalorder %s3393_s20, %s3393_s20 }
  0x1d   :  { %p3400_p0 = por %p3399_p13, %p3398_p12 }
  0x1f   :  { %p3401_p1 = pnand %p3400_p0, %p3394_p11 }
  0x21   :  { %3404 = shalt.err (!%p3401_p1)
}
  0x22   :  { %45 = dma.hbm_to_vmem [thread:$0]  %s3741_s5, 6912, %s40_s12, [#allocation6], %s3434_s7, %s3434_s7, %s3435_s8  }
  0x23   :  { %3427 = dma.done.wait [#allocation3], 5376  }
  0x24   :  { %3428 = vsyncadd [#allocation3], 4294961920 }
  0x25   :  { %3429 = dma.done.wait [#allocation6], 6912  }
  0x26   :  { %3430 = vsyncadd [#allocation6], 4294960384  ;;  %v3437_v0 = vmov 0.0   ;;  %vm3438_vm0 = vmmov 0   ;;  %vm69_vm1 = vcmask 1042432   ;;  %vm65_vm2 = vcmask 23552  }
  0x27   :  { %2918 = vmatprep.subr.mxu1 %v3437_v0  ;;  %2920 = vmatprep.mubr.msk.f32.mxu1 %vm3438_vm0, %v3437_v0  ;;  %v57_v1 = vld [vmem:[#allocation5] sm:$0x7]  ;;  %v60_v2 = vld [vmem:[%s3736_s0] sm:$0xff]  ;;  %v145_v4 = vld [vmem:[#allocation2 + $0x8] sm:$0xff]  ;;  %v3439_v8 = vmov 0.0|0.0   ;;  %vm160_vm3 = vcmask 130048  }
  0x28   :  { %2934 = vmatprep.mubr.msk.f32.mxu0 %vm3438_vm0, %v3437_v0  ;;  %2919 = vmatpush3.msk.msra.mxu1 %vm69_vm1, %v57_v1  ;;  %v144_v3 = vld [vmem:[#allocation2] sm:$0xff]  ;;  %v146_v5 = vld [vmem:[#allocation2 + $0x10] sm:$0xff]  ;;  %v147_v7 = vld [vmem:[#allocation2 + $0x18] sm:$0xff]  ;;  %vm500_vm4 = vcmask 64512   ;;  %vm847_vm5 = vcmask 523264   ;;  %vm1833_vm6 = vcmask 1043456  }
  0x29   :  { %2921 = vmatmul.mubr.msk.f32.vlgmr.msra.gmra.mrb[0].mxu1 %vm65_vm2, %v60_v2  ;;  %v3192_v6 = vpack.c.bf16 %v145_v4, %v144_v3  ;;  %3191 = vmatprep.subr.bf16.mxu1 %v3439_v8  ;;  %v3195_v9 = vpack.c.bf16 %v147_v7, %v146_v5  ;;  %v2721_v10 = vld [vmem:[#allocation5 + $0x3] ss:$0 sm:$0xff]  ;;  %v148_v11 = vld [vmem:[#allocation2 + $0x20] sm:$0xff]  ;;  %v149_v12 = vld [vmem:[#allocation2 + $0x28] sm:$0xff]  ;;  %vm1911_vm7 = vcmask 1046528   ;;  %vm1829_vm8 = vcmask 31744  }
  0x2a   :  { %2927 = vmatprep.mubr.msk.f32.mxu1 %vm3438_vm0, %v3437_v0  ;;  %3194 = vmatprep.subr.bf16.mxu0 %v3439_v8  ;;  %v59_v13 = vld [vmem:[#allocation5 + $0x8] sm:$0xff]  ;;  %v3198_v17 = vpack.c.bf16 %v149_v12, %v148_v11  ;;  %v2724_v19 = vld [vmem:[#allocation2 + $0x40] ss:$0 sm:$0xff]  ;;  %v2726_v20 = vld [vmem:[#allocation2 + $0x41] ss:$0 sm:$0xff]  ;;  %vm3440_vm9 = vmmov 1  }
  0x2b   :  { %3193 = vmatpush3.bf16.msra.mxu1 %v3192_v6  ;;  %3196 = vmatpush3.bf16.msra.mxu0 %v3195_v9  ;;  %v3526_v23 = vld [vmem:[#allocation5 + $0x190] sm:$0xff]  ;;  %v3528_v28 = vld [vmem:[#allocation5 + $0x198] sm:$0xff]  ;;  %v3532_v31 = vld [vmem:[#allocation5 + $0x1a0] sm:$0xff]  ;;  %vm1907_vm11 = vcmask 121856   ;;  %vm2310_vm12 = vcmask 195584  }
  0x2c   :  { %3197 = vmatprep.subr.bf16.mxu1 %v3439_v8  ;;  %v2728_v29 = vld [vmem:[#allocation2 + $0x42] ss:$0 sm:$0xff]  ;;  %v3539_v37 = vld [vmem:[#allocation5 + $0x1a8] sm:$0xff]  ;;  %v3551_v41 = vld [vmem:[%s3737_s1] ss:$0 sm:$0xff] }
  0x2d   :  { %vm3250_vm10 = vmpackc.low %vm1911_vm7, %vm3440_vm9 }
  0xfc   :  { %v139_v14 = vpop.f32.mrb[0].mxu1 }
  0xfd   :  { %v140_v15 = vadd.f32 %v2721_v10, %v139_v14  ;;  %v2922_v16 = vpop.f32.mrb[1].mxu1 }
  0xff   :  { %v3516_v18 = vadd.f32 %v140_v15, %v59_v13 }
 0x101   :  { %2928 = vmatmul.mubr.msk.f32.vlgmr.msra.gmra.mrb[2].mxu1 %vm160_vm3, %v3516_v18  ;;  %2935 = vmatmul.mubr.msk.f32.vlgmr.msra.gmra.mrb[0].mxu0 %vm160_vm3, %v3516_v18 }
 0x102   :  { %3199 = vmatpush3.bf16.msra.mxu1 %v3198_v17  ;;  %2941 = vmatprep.mubr.msk.f32.mxu1 %vm3438_vm0, %v3437_v0 }
 0x105   :  { %2942 = vmatmul.mubr.msk.f32.vlgmr.msra.gmra.mrb[4].mxu1 %vm160_vm3, %v3516_v18 }
 0x1d4   :  { %v230_v21 = vpop.f32.mrb[2].mxu1  ;;  %v304_v22 = vpop.f32.mrb[0].mxu0 }
 0x1d5   :  { %v231_v24 = vadd.f32 %v2724_v19, %v230_v21  ;;  %v305_v25 = vadd.f32 %v2726_v20, %v304_v22  ;;  %v2929_v26 = vpop.f32.mrb[3].mxu1  ;;  %v2936_v27 = vpop.f32.mrb[1].mxu0 }
 0x1d7   :  { %2944 = vmatprep.subr.msk.mxu0 %vm160_vm3, %v305_v25  ;;  %v382_v30 = vmul.f32 %v231_v24, %v3526_v23  ;;  %v383_v33 = vmul.f32 %v231_v24, %v3528_v28  ;;  %v384_v36 = vmul.f32 %v231_v24, %v3532_v31  ;;  %v385_v38 = vmul.f32 %v231_v24, %v3539_v37 }
 0x1d8   :  { %v378_v32 = vpop.f32.mrb[4].mxu1  ;;  %2945 = vmatpush3.xpose.msk.msra.mxu0 %vm160_vm3, %v305_v25 }
 0x1d9   :  { %v379_v34 = vadd.f32 %v2728_v29, %v378_v32  ;;  %v2943_v35 = vpop.f32.mrb[5].mxu1  ;;  %2946 = vmatprep.mubr.msk.f32.mxu0 %vm160_vm3, %v382_v30  ;;  %3200 = vmatprep.subr.bf16.mxu0 %v3439_v8  ;;  %v150_v29 = vld [vmem:[#allocation2 + $0x30] sm:$0xff]  ;;  %v151_v30 = vld [vmem:[#allocation2 + $0x38] sm:$0xff] }
 0x1da   :  { %v3201_v32 = vpack.c.bf16 %v151_v30, %v150_v29 }
 0x1db   :  { %2947 = vmatmul.mubr.msk.f32.vlgmr.msra.gmra.mrb[2].mxu0 %vm160_vm3, %v383_v33  ;;  %2952 = vmatprep.subr.mxu1 %v379_v34 }
 0x1dc   :  { %2949 = vmatprep.mubr.msk.f32.mxu0 %vm160_vm3, %v384_v36  ;;  %2953 = vmatpush3.msra.mxu1 %v379_v34 }
 0x1dd   :  { %3203 = vmatprep.subr.bf16.mxu1 %v3439_v8  ;;  %3202 = vmatpush3.bf16.msra.mxu0 %v3201_v32 }
 0x1de   :  { %3206 = vmatprep.subr.bf16.mxu0 %v3439_v8 }
 0x1df   :  { %2950 = vmatmul.mubr.msk.f32.gmra.mrb[4].mxu0 %vm160_vm3, %v385_v38 }
 0x1e0   :  { %2964 = vmatprep.mubr.msk.f32.mxu0 %vm3438_vm0, %v3437_v0 }
 0x2ae   :  { %v2948_v39 = vpop.f32.mrb[2].mxu0 }
 0x2af   :  { %v467_v40 = vpop.f32.mrb[3].mxu0  ;;  %v487_v42 = vmul.f32 0.5, %v2948_v39 }
 0x2b0   :  { %v486_v43 = vmul.f32 0.5, %v467_v40 }
 0x2b1   :  { %v497_v50 = vadd.f32 %v3551_v41, %v487_v42 }
 0x2b2   :  { %v2951_v44 = vpop.f32.mrb[4].mxu0  ;;  %v496_v45 = vadd.f32 %v3551_v41, %v486_v43 }
 0x2b3   :  { %v477_v46 = vpop.f32.mrb[5].mxu0  ;;  %v489_v47 = vmul.f32 0.5, %v2951_v44  ;;  %v504_v53 = vsel %vm500_vm4, %v497_v50, -inf }
 0x2b4   :  { %v488_v48 = vmul.f32 0.5, %v477_v46  ;;  %v501_v49 = vsel %vm500_vm4, %v496_v45, -inf  ;;  %v2740_v46 = vld [vmem:[#allocation2 + $0x43] ss:$0 sm:$0xff] }
 0x2b5   :  { %502 = vmax.xlane.f32.xlu0 %v501_v49  ;;  %v499_v54 = vadd.f32 %v3551_v41, %v489_v47 }
 0x2b6   :  { %v498_v51 = vadd.f32 %v3551_v41, %v488_v48 }
 0x2b7   :  { %v510_v55 = vsel %vm500_vm4, %v499_v54, -inf }
 0x2b8   :  { %v507_v52 = vsel %vm500_vm4, %v498_v51, -inf }
 0x2b9   :  { %508 = vmax.xlane.f32.xlu1 %v507_v52  ;;  %505 = vmax.xlane.f32.xlu0 %v504_v53 }
 0x2bd   :  { %511 = vmax.xlane.f32.xlu1 %v510_v55 }
 0x342   :  { %v503_v56 = vpop.xlane.xlu0 %502 }
 0x343   :  { %v513_v57 = vsub.f32 %v496_v45, %v503_v56 }
 0x345   :  { %v517_v58 = vmul.f32 1.442695, %v513_v57  ;;  %v753_v57 = vld [vmem:[#allocation2 + $0x48] sm:$0xff] }
 0x346   :  { %v509_v59 = vpop.xlane.xlu1 %508  ;;  %v506_v60 = vpop.xlane.xlu0 %505 }
 0x347   :  { %3315 = vpow2.f32 %v517_v58  ;;  %v515_v61 = vsub.f32 %v498_v51, %v509_v59  ;;  %v514_v62 = vsub.f32 %v497_v50, %v506_v60  ;;  %v754_v58 = vld [vmem:[#allocation2 + $0x50] sm:$0xff]  ;;  %v756_v60 = vld [vmem:[#allocation2 + $0x60] sm:$0xff] }
 0x348   :  { %v3204_v59 = vpack.c.bf16 %v754_v58, %v753_v57  ;;  %v2750_v58 = vld [vmem:[#allocation2 + $0xe8] ss:$0 sm:$0xff] }
 0x349   :  { %v521_v63 = vmul.f32 1.442695, %v515_v61  ;;  %v519_v1 = vmul.f32 1.442695, %v514_v62  ;;  %v757_v61 = vld [vmem:[#allocation2 + $0x68] sm:$0xff]  ;;  %v758_v62 = vld [vmem:[#allocation2 + $0x70] sm:$0xff] }
 0x34a   :  { %v512_v2 = vpop.xlane.xlu1 %511 }
 0x34b   :  { %3317 = vpow2.f32 %v521_v63  ;;  %v516_v3 = vsub.f32 %v499_v54, %v512_v2  ;;  %v759_v63 = vld [vmem:[#allocation2 + $0x78] sm:$0xff]  ;;  %v760_v2 = vld [vmem:[#allocation2 + $0x80] sm:$0xff] }
 0x34c   :  { %3319 = vpow2.f32 %v519_v1  ;;  %v3210_v1 = vpack.c.bf16 %v759_v63, %v758_v62  ;;  %v2752_v62 = vld [vmem:[#allocation2 + $0xe9] ss:$0 sm:$0xff] }
 0x34d   :  { %v523_v4 = vmul.f32 1.442695, %v516_v3  ;;  %v761_v3 = vld [vmem:[#allocation2 + $0x88] sm:$0xff] }
 0x34f   :  { %3321 = vpow2.f32 %v523_v4  ;;  %v3213_v4 = vpack.c.bf16 %v761_v3, %v760_v2  ;;  %v2754_v3 = vld [vmem:[#allocation2 + $0xea] ss:$0 sm:$0xff] }
 0x351   :  { %v3316_v5 = vpop.eup %3315 }
 0x352   :  { %v525_v6 = vsel %vm500_vm4, %v3316_v5, 0.0 }
 0x353   :  { %526 = vadd.xlane.f32.xlu0 %v525_v6 }
 0x355   :  { %v3318_v7 = vpop.eup %3317 }
 0x356   :  { %v3320_v9 = vpop.eup %3319  ;;  %v531_v10 = vsel %vm500_vm4, %v3318_v7, 0.0 }
 0x357   :  { %532 = vadd.xlane.f32.xlu0 %v531_v10  ;;  %v528_v11 = vsel %vm500_vm4, %v3320_v9, 0.0  ;;  %v2742_v10 = vld [vmem:[#allocation2 + $0x44] ss:$0 sm:$0xff] }
 0x358   :  { %529 = vadd.xlane.f32.xlu1 %v528_v11 }
 0x359   :  { %v3322_v12 = vpop.eup %3321 }
 0x35a   :  { %v534_v13 = vsel %vm500_vm4, %v3322_v12, 0.0 }
 0x35c   :  { %535 = vadd.xlane.f32.xlu1 %v534_v13 }
 0x3e0   :  { %v527_v14 = vpop.xlane.xlu0 %526 }
 0x3e1   :  { %3323 = vrcp.f32 %v527_v14 }
 0x3e4   :  { %v533_v15 = vpop.xlane.xlu0 %532 }
 0x3e5   :  { %v530_v16 = vpop.xlane.xlu1 %529  ;;  %3325 = vrcp.f32 %v533_v15  ;;  %v762_v15 = vld [vmem:[#allocation2 + $0x90] sm:$0xff] }
 0x3e6   :  { %3327 = vrcp.f32 %v530_v16  ;;  %v763_v16 = vld [vmem:[#allocation2 + $0x98] sm:$0xff] }
 0x3e9   :  { %v536_v17 = vpop.xlane.xlu1 %535 }
 0x3ea   :  { %3329 = vrcp.f32 %v536_v17  ;;  %v3216_v17 = vpack.c.bf16 %v763_v16, %v762_v15 }
 0x3eb   :  { %v3324_v19 = vpop.eup %3323 }
 0x3ec   :  { %v538_v20 = vmul.f32 %v3324_v19, %v3316_v5  ;;  %v2744_v19 = vld [vmem:[#allocation2 + $0x58] ss:$0 sm:$0xff] }
 0x3ee   :  { %2954 = vmatprep.mubr.msk.f32.mxu1 %vm500_vm4, %v538_v20 }
 0x3ef   :  { %v3326_v21 = vpop.eup %3325 }
 0x3f0   :  { %v3328_v22 = vpop.eup %3327  ;;  %v542_v24 = vmul.f32 %v3326_v21, %v3318_v7 }
 0x3f1   :  { %v540_v25 = vmul.f32 %v3328_v22, %v3320_v9 }
 0x3f3   :  { %2955 = vmatmul.mubr.msk.f32.vlgmr.msra.gmra.mrb[6].mxu1 %vm500_vm4, %v540_v25  ;;  %v2746_v25 = vld [vmem:[#allocation2 + $0xa0] ss:$0 sm:$0xff] }
 0x3f4   :  { %v3330_v26 = vpop.eup %3329  ;;  %2957 = vmatprep.mubr.msk.f32.mxu1 %vm500_vm4, %v542_v24  ;;  %3205 = vmatpush3.bf16.msra.mxu1 %v3204_v59 }
 0x3f5   :  { %v544_v27 = vmul.f32 %v3330_v26, %v3322_v12  ;;  %3218 = vmatprep.subr.bf16.mxu1 %v3439_v8  ;;  %v2743_v12 = vld [vmem:[#allocation2 + $0x45] ss:$0 sm:$0xff] }
 0x3f7   :  { %2958 = vmatmul.mubr.msk.f32.gmra.mrb[8].mxu1 %vm500_vm4, %v544_v27 }
 0x3f8   :  { %2971 = vmatprep.mubr.msk.f32.mxu1 %vm3438_vm0, %v3437_v0 }
 0x4c6   :  { %v2956_v33 = vpop.f32.mrb[6].mxu1 }
 0x4c7   :  { %v643_v34 = vmul.f32 %v2956_v33, %v3528_v28  ;;  %v623_v35 = vpop.f32.mrb[7].mxu1 }
 0x4c8   :  { %v642_v36 = vmul.f32 %v623_v35, %v3526_v23 }
 0x4ca   :  { %v646_v38 = vadd.f32 %v643_v34, %v642_v36  ;;  %v2959_v39 = vpop.f32.mrb[8].mxu1 }
 0x4cb   :  { %v633_v40 = vpop.f32.mrb[9].mxu1  ;;  %v645_v43 = vmul.f32 %v2959_v39, %v3539_v37  ;;  %v947_v39 = vld [vmem:[#allocation2 + $0xa8] sm:$0xff] }
 0x4cc   :  { %v644_v42 = vmul.f32 %v633_v40, %v3532_v31  ;;  %v948_v40 = vld [vmem:[#allocation2 + $0xb0] sm:$0xff] }
 0x4ce   :  { %v647_v44 = vadd.f32 %v646_v38, %v644_v42  ;;  %v3219_v42 = vpack.c.bf16 %v948_v40, %v947_v39 }
 0x4d0   :  { %v648_v45 = vadd.f32 %v647_v44, %v645_v43 }
 0x4d2   :  { %2965 = vmatmul.mubr.msk.f32.vlgmr.msra.gmra.mrb[6].mxu0 %vm160_vm3, %v648_v45 }
 0x4d3   :  { %2990 = vmatprep.mubr.msk.f32.mxu0 %vm3438_vm0, %v3437_v0 }
 0x5a5   :  { %v722_v47 = vpop.f32.mrb[6].mxu0 }
 0x5a6   :  { %v723_v48 = vadd.f32 %v2740_v46, %v722_v47  ;;  %v2966_v49 = vpop.f32.mrb[7].mxu0  ;;  %v2748_v47 = vld [vmem:[#allocation2 + $0x46] ss:$0 sm:$0xff] }
 0x5a7   :  { %v949_v49 = vld [vmem:[#allocation2 + $0xb8] sm:$0xff] }
 0x5a8   :  { %v726_v50 = vadd.f32 %v723_v48, %v3516_v18  ;;  %v3207_v18 = vpack.c.bf16 %v757_v61, %v756_v60 }
 0x5aa   :  { %v729_v51 = vsel %vm160_vm3, %v726_v50, 0.0  ;;  %3208 = vmatpush3.bf16.msra.mxu0 %v3207_v18 }
 0x5ab   :  { %730 = vadd.xlane.f32.xlu0 %v729_v51  ;;  %3209 = vmatprep.subr.bf16.mxu0 %v3439_v8  ;;  %v2749_v51 = vld [vmem:[#allocation2 + $0x47] ss:$0 sm:$0xff] }
 0x5ae   :  { %3211 = vmatpush3.bf16.msra.mxu0 %v3210_v1 }
 0x5af   :  { %3212 = vmatprep.subr.bf16.mxu0 %v3439_v8 }
 0x5b2   :  { %3214 = vmatpush3.bf16.msra.mxu0 %v3213_v4 }
 0x5b3   :  { %3215 = vmatprep.subr.bf16.mxu0 %v3439_v8 }
 0x5b6   :  { %3217 = vmatpush3.bf16.msra.mxu0 %v3216_v17 }
 0x638   :  { %v731_v52 = vpop.xlane.xlu0 %730 }
 0x639   :  { %v733_v53 = vmul.f32 0.0625, %v731_v52 }
 0x63b   :  { %v734_v54 = vsub.f32 %v726_v50, %v733_v53  ;;  %v950_v50 = vld [vmem:[#allocation2 + $0xc0] sm:$0xff] }
 0x63c   :  { %v3222_v53 = vpack.c.bf16 %v950_v50, %v949_v49 }
 0x63d   :  { %v735_v55 = vmul.f32 %v734_v54, %v734_v54 }
 0x63f   :  { %v736_v56 = vsel %vm160_vm3, %v735_v55, 0.0  ;;  %v951_v55 = vld [vmem:[#allocation2 + $0xc8] sm:$0xff] }
 0x640   :  { %737 = vadd.xlane.f32.xlu1 %v736_v56  ;;  %v952_v56 = vld [vmem:[#allocation2 + $0xd0] sm:$0xff] }
 0x641   :  { %v3225_v57 = vpack.c.bf16 %v952_v56, %v951_v55 }
 0x6cd   :  { %v738_v5 = vpop.xlane.xlu1 %737 }
 0x6ce   :  { %v739_v6 = vmul.f32 0.0625, %v738_v5 }
 0x6d0   :  { %v740_v7 = vadd.f32 1e-05, %v739_v6 }
 0x6d2   :  { %3331 = vrsqrt.f32 %v740_v7 }
 0x6dc   :  { %v3332_v9 = vpop.eup %3331 }
 0x6dd   :  { %v742_v11 = vmul.f32 %v3332_v9, %v734_v54 }
 0x6df   :  { %v747_v13 = vmul.f32 %v2742_v10, %v742_v11 }
 0x6e1   :  { %v752_v14 = vadd.f32 %v2743_v12, %v747_v13 }
 0x6e3   :  { %2972 = vmatmul.mubr.msk.f32.vlgmr.msra.gmra.mrb[10].mxu1 %vm160_vm3, %v752_v14 }
 0x6e4   :  { %2997 = vmatprep.mubr.msk.f32.mxu1 %vm3438_vm0, %v3437_v0  ;;  %3220 = vmatpush3.bf16.msra.mxu1 %v3219_v42 }
 0x6e5   :  { %3221 = vmatprep.subr.bf16.mxu1 %v3439_v8 }
 0x7b6   :  { %v838_v20 = vpop.f32.mrb[10].mxu1 }
 0x7b7   :  { %v839_v21 = vadd.f32 %v2744_v19, %v838_v20  ;;  %v2973_v22 = vpop.f32.mrb[11].mxu1 }
 0x7b9   :  { %v842_v24 = vmax.f32 %v839_v21, 0.0 }
 0x7bb   :  { %2991 = vmatmul.mubr.msk.f32.vlgmr.msra.gmra.mrb[8].mxu0 %vm847_vm5, %v842_v24 }
 0x88e   :  { %v917_v26 = vpop.f32.mrb[8].mxu0 }
 0x88f   :  { %v918_v27 = vadd.f32 %v2746_v25, %v917_v26  ;;  %v2992_v29 = vpop.f32.mrb[9].mxu0 }
 0x891   :  { %v921_v30 = vadd.f32 %v918_v27, %v752_v14 }
 0x893   :  { %v924_v32 = vsel %vm160_vm3, %v921_v30, 0.0 }
 0x894   :  { %925 = vadd.xlane.f32.xlu0 %v924_v32 }
 0x921   :  { %v926_v33 = vpop.xlane.xlu0 %925 }
 0x922   :  { %v927_v34 = vmul.f32 0.0625, %v926_v33 }
 0x924   :  { %v928_v35 = vsub.f32 %v921_v30, %v927_v34 }
 0x926   :  { %v929_v36 = vmul.f32 %v928_v35, %v928_v35 }
 0x928   :  { %v930_v38 = vsel %vm160_vm3, %v929_v36, 0.0 }
 0x929   :  { %931 = vadd.xlane.f32.xlu1 %v930_v38 }
 0x9b6   :  { %v932_v43 = vpop.xlane.xlu1 %931 }
 0x9b7   :  { %v933_v44 = vmul.f32 0.0625, %v932_v43 }
 0x9b9   :  { %v934_v45 = vadd.f32 1e-05, %v933_v44 }
 0x9bb   :  { %3333 = vrsqrt.f32 %v934_v45 }
 0x9c5   :  { %v3334_v46 = vpop.eup %3333 }
 0x9c6   :  { %v936_v48 = vmul.f32 %v3334_v46, %v928_v35 }
 0x9c8   :  { %v941_v52 = vmul.f32 %v2748_v47, %v936_v48 }
 0x9ca   :  { %v3593_v54 = vadd.f32 %v2749_v51, %v941_v52 }
 0x9cc   :  { %2998 = vmatmul.mubr.msk.f32.vlgmr.msra.gmra.mrb[12].mxu1 %vm160_vm3, %v3593_v54 }
 0x9cd   :  { %3223 = vmatpush3.bf16.msra.mxu1 %v3222_v53  ;;  %3004 = vmatprep.mubr.msk.f32.mxu1 %vm3438_vm0, %v3437_v0 }
 0x9ce   :  { %3224 = vmatprep.subr.bf16.mxu1 %v3439_v8 }
 0x9d0   :  { %3005 = vmatmul.mubr.msk.f32.vlgmr.msra.gmra.mrb[14].mxu1 %vm160_vm3, %v3593_v54 }
 0x9d1   :  { %3226 = vmatpush3.bf16.msra.mxu1 %v3225_v57  ;;  %3011 = vmatprep.mubr.msk.f32.mxu1 %vm3438_vm0, %v3437_v0 }
 0x9d4   :  { %3012 = vmatmul.mubr.msk.f32.vlgmr.msra.gmra.mrb[16].mxu1 %vm160_vm3, %v3593_v54 }
 0xa9f   :  { %v1032_v59 = vpop.f32.mrb[12].mxu1 }
 0xaa0   :  { %v1033_v60 = vadd.f32 %v2750_v58, %v1032_v59  ;;  %v2999_v61 = vpop.f32.mrb[13].mxu1 }
 0xaa2   :  { %v1184_v18 = vmul.f32 %v1033_v60, %v3526_v23  ;;  %v1185_v5 = vmul.f32 %v1033_v60, %v3528_v28  ;;  %v1186_v9 = vmul.f32 %v1033_v60, %v3532_v31  ;;  %v1187_v10 = vmul.f32 %v1033_v60, %v3539_v37 }
 0xaa3   :  { %v1106_v63 = vpop.f32.mrb[14].mxu1 }
 0xaa4   :  { %v1107_v1 = vadd.f32 %v2752_v62, %v1106_v63  ;;  %v3006_v2 = vpop.f32.mrb[15].mxu1  ;;  %3016 = vmatprep.mubr.msk.f32.mxu1 %vm160_vm3, %v1184_v18 }
 0xaa5   :  { %v954_v2 = vld [vmem:[#allocation2 + $0xe0] sm:$0xff] }
 0xaa6   :  { %3014 = vmatprep.subr.msk.mxu1 %vm160_vm3, %v1107_v1 }
 0xaa7   :  { %v1180_v4 = vpop.f32.mrb[16].mxu1  ;;  %3015 = vmatpush3.xpose.msk.msra.mxu1 %vm160_vm3, %v1107_v1  ;;  %v953_v1 = vld [vmem:[#allocation2 + $0xd8] sm:$0xff] }
 0xaa8   :  { %v1181_v6 = vadd.f32 %v2754_v3, %v1180_v4  ;;  %v3013_v7 = vpop.f32.mrb[17].mxu1  ;;  %3227 = vmatprep.subr.bf16.mxu1 %v3439_v8  ;;  %v3228_v3 = vpack.c.bf16 %v954_v2, %v953_v1 }
 0xaaa   :  { %3017 = vmatmul.mubr.msk.f32.vlgmr.msra.gmra.mrb[18].mxu1 %vm160_vm3, %v1185_v5  ;;  %3022 = vmatprep.subr.mxu0 %v1181_v6 }
 0xaab   :  { %3019 = vmatprep.mubr.msk.f32.mxu1 %vm160_vm3, %v1186_v9  ;;  %3023 = vmatpush3.msra.mxu0 %v1181_v6 }
 0xaac   :  { %3230 = vmatprep.subr.bf16.mxu0 %v3439_v8  ;;  %3229 = vmatpush3.bf16.msra.mxu1 %v3228_v3 }
 0xaad   :  { %3233 = vmatprep.subr.bf16.mxu1 %v3439_v8 }
 0xaae   :  { %3020 = vmatmul.mubr.msk.f32.gmra.mrb[20].mxu1 %vm160_vm3, %v1187_v10 }
 0xaaf   :  { %3034 = vmatprep.mubr.msk.f32.mxu1 %vm3438_vm0, %v3437_v0 }
 0xb7d   :  { %v3018_v11 = vpop.f32.mrb[18].mxu1 }
 0xb7e   :  { %v1289_v12 = vmul.f32 0.5, %v3018_v11  ;;  %v1269_v13 = vpop.f32.mrb[19].mxu1 }
 0xb7f   :  { %v1288_v14 = vmul.f32 0.5, %v1269_v13 }
 0xb80   :  { %v1293_v15 = vadd.f32 %v3551_v41, %v1289_v12 }
 0xb81   :  { %v3021_v16 = vpop.f32.mrb[20].mxu1  ;;  %v1292_v17 = vadd.f32 %v3551_v41, %v1288_v14 }
 0xb82   :  { %v1291_v19 = vmul.f32 0.5, %v3021_v16  ;;  %v1279_v20 = vpop.f32.mrb[21].mxu1  ;;  %v1299_v21 = vsel %vm500_vm4, %v1293_v15, -inf  ;;  %v2765_v16 = vld [vmem:[#allocation2 + $0xeb] ss:$0 sm:$0xff] }
 0xb83   :  { %v1290_v22 = vmul.f32 0.5, %v1279_v20  ;;  %1300 = vmax.xlane.f32.xlu1 %v1299_v21  ;;  %v1296_v24 = vsel %vm500_vm4, %v1292_v17, -inf }
 0xb84   :  { %1297 = vmax.xlane.f32.xlu0 %v1296_v24  ;;  %v1295_v25 = vadd.f32 %v3551_v41, %v1291_v19 }
 0xb85   :  { %v1294_v26 = vadd.f32 %v3551_v41, %v1290_v22 }
 0xb86   :  { %v1305_v27 = vsel %vm500_vm4, %v1295_v25, -inf }
 0xb87   :  { %1306 = vmax.xlane.f32.xlu1 %v1305_v27  ;;  %v1302_v29 = vsel %vm500_vm4, %v1294_v26, -inf }
 0xb88   :  { %1303 = vmax.xlane.f32.xlu0 %v1302_v29  ;;  %v1550_v29 = vld [vmem:[#allocation2 + $0x108] sm:$0xff] }
 0xc10   :  { %v1301_v30 = vpop.xlane.xlu1 %1300 }
 0xc11   :  { %v1309_v32 = vsub.f32 %v1293_v15, %v1301_v30  ;;  %v1298_v33 = vpop.xlane.xlu0 %1297  ;;  %v1551_v30 = vld [vmem:[#allocation2 + $0x110] sm:$0xff] }
 0xc12   :  { %v1308_v34 = vsub.f32 %v1292_v17, %v1298_v33  ;;  %v1553_v33 = vld [vmem:[#allocation2 + $0x120] sm:$0xff] }
 0xc13   :  { %v1314_v35 = vmul.f32 1.442695, %v1309_v32  ;;  %v1552_v32 = vld [vmem:[#allocation2 + $0x118] sm:$0xff] }
 0xc14   :  { %v1312_v36 = vmul.f32 1.442695, %v1308_v34  ;;  %v1307_v38 = vpop.xlane.xlu1 %1306  ;;  %v3237_v34 = vpack.c.bf16 %v1553_v33, %v1552_v32 }
 0xc15   :  { %3335 = vpow2.f32 %v1314_v35  ;;  %v1311_v39 = vsub.f32 %v1295_v25, %v1307_v38  ;;  %v1304_v40 = vpop.xlane.xlu0 %1303  ;;  %v1547_v25 = vld [vmem:[#allocation2 + $0xf0] sm:$0xff]  ;;  %v1554_v35 = vld [vmem:[#allocation2 + $0x128] sm:$0xff] }
 0xc16   :  { %3337 = vpow2.f32 %v1312_v36  ;;  %v1310_v42 = vsub.f32 %v1294_v26, %v1304_v40  ;;  %v1548_v26 = vld [vmem:[#allocation2 + $0xf8] sm:$0xff]  ;;  %v1555_v36 = vld [vmem:[#allocation2 + $0x130] sm:$0xff] }
 0xc17   :  { %v1318_v43 = vmul.f32 1.442695, %v1311_v39  ;;  %v3231_v27 = vpack.c.bf16 %v1548_v26, %v1547_v25  ;;  %v3240_v38 = vpack.c.bf16 %v1555_v36, %v1554_v35  ;;  %v2071_v25 = vld [vmem:[#allocation5 + $0x88] sm:$0xff]  ;;  %v1988_v35 = vld [vmem:[#allocation5 + $0x40] sm:$0xff] }
 0xc18   :  { %v1316_v41 = vmul.f32 1.442695, %v1310_v42  ;;  %v1989_v36 = vld [vmem:[#allocation5 + $0x48] sm:$0xff] }
 0xc19   :  { %3339 = vpow2.f32 %v1318_v43 }
 0xc1a   :  { %3341 = vpow2.f32 %v1316_v41  ;;  %v2767_v41 = vld [vmem:[#allocation2 + $0xec] ss:$0 sm:$0xff] }
 0xc1f   :  { %v3336_v44 = vpop.eup %3335 }
 0xc20   :  { %v3338_v45 = vpop.eup %3337  ;;  %v1323_v46 = vsel %vm500_vm4, %v3336_v44, 0.0 }
 0xc21   :  { %1324 = vadd.xlane.f32.xlu1 %v1323_v46  ;;  %v1320_v47 = vsel %vm500_vm4, %v3338_v45, 0.0 }
 0xc22   :  { %1321 = vadd.xlane.f32.xlu0 %v1320_v47 }
 0xc23   :  { %v3340_v48 = vpop.eup %3339 }
 0xc24   :  { %v3342_v49 = vpop.eup %3341  ;;  %v1329_v50 = vsel %vm500_vm4, %v3340_v48, 0.0 }
 0xc25   :  { %1330 = vadd.xlane.f32.xlu1 %v1329_v50  ;;  %v1326_v51 = vsel %vm500_vm4, %v3342_v49, 0.0 }
 0xc26   :  { %1327 = vadd.xlane.f32.xlu0 %v1326_v51  ;;  %v2769_v51 = vld [vmem:[#allocation2 + $0x100] ss:$0 sm:$0xff] }
 0xcae   :  { %v1325_v52 = vpop.xlane.xlu1 %1324 }
 0xcaf   :  { %3343 = vrcp.f32 %v1325_v52  ;;  %v1322_v53 = vpop.xlane.xlu0 %1321 }
 0xcb0   :  { %3345 = vrcp.f32 %v1322_v53 }
 0xcb2   :  { %v1331_v55 = vpop.xlane.xlu1 %1330 }
 0xcb3   :  { %3347 = vrcp.f32 %v1331_v55  ;;  %v1328_v56 = vpop.xlane.xlu0 %1327 }
 0xcb4   :  { %3349 = vrcp.f32 %v1328_v56 }
 0xcb9   :  { %v3344_v57 = vpop.eup %3343 }
 0xcba   :  { %v3346_v58 = vpop.eup %3345  ;;  %v1335_v60 = vmul.f32 %v3344_v57, %v3336_v44  ;;  %v2771_v57 = vld [vmem:[#allocation2 + $0x148] ss:$0 sm:$0xff] }
 0xcbb   :  { %v1333_v59 = vmul.f32 %v3346_v58, %v3338_v45  ;;  %v2768_v45 = vld [vmem:[#allocation2 + $0xed] ss:$0 sm:$0xff] }
 0xcbd   :  { %v3348_v61 = vpop.eup %3347  ;;  %3024 = vmatprep.mubr.msk.f32.mxu0 %vm500_vm4, %v1333_v59 }
 0xcbe   :  { %v3350_v62 = vpop.eup %3349  ;;  %3025 = vmatmul.mubr.msk.f32.vlgmr.msra.gmra.mrb[10].mxu0 %vm500_vm4, %v1335_v60  ;;  %v1339_v63 = vmul.f32 %v3348_v61, %v3340_v48  ;;  %v1556_v48 = vld [vmem:[#allocation2 + $0x138] sm:$0xff] }
 0xcbf   :  { %v1337_v18 = vmul.f32 %v3350_v62, %v3342_v49  ;;  %3232 = vmatpush3.bf16.msra.mxu0 %v3231_v27  ;;  %v1557_v49 = vld [vmem:[#allocation2 + $0x140] sm:$0xff]  ;;  %v1826_v27 = vld [vmem:[#allocation5 + $0x28] sm:$0xff] }
 0xcc0   :  { %3245 = vmatprep.subr.bf16.mxu0 %v3439_v8  ;;  %v3243_v50 = vpack.c.bf16 %v1557_v49, %v1556_v48  ;;  %v2074_v49 = vld [vmem:[#allocation5 + $0xa0] sm:$0xff] }
 0xcc1   :  { %3027 = vmatprep.mubr.msk.f32.mxu0 %vm500_vm4, %v1337_v18 }
 0xcc2   :  { %3028 = vmatmul.mubr.msk.f32.gmra.mrb[12].mxu0 %vm500_vm4, %v1339_v63 }
 0xcc3   :  { %3041 = vmatprep.mubr.msk.f32.mxu0 %vm3438_vm0, %v3437_v0 }
 0xd91   :  { %v3026_v4 = vpop.f32.mrb[10].mxu0 }
 0xd92   :  { %v1438_v5 = vmul.f32 %v3026_v4, %v3528_v28  ;;  %v1418_v6 = vpop.f32.mrb[11].mxu0  ;;  %v1749_v4 = vld [vmem:[#allocation5 + $0x10] sm:$0xff] }
 0xd93   :  { %v1437_v7 = vmul.f32 %v1418_v6, %v3526_v23 }
 0xd95   :  { %v1441_v9 = vadd.f32 %v1438_v5, %v1437_v7  ;;  %v3029_v10 = vpop.f32.mrb[12].mxu0  ;;  %v1750_v5 = vld [vmem:[#allocation5 + $0x18] sm:$0xff] }
 0xd96   :  { %v1428_v11 = vpop.f32.mrb[13].mxu0  ;;  %v1440_v13 = vmul.f32 %v3029_v10, %v3539_v37  ;;  %v3246_v6 = vpack.c.bf16 %v1750_v5, %v1749_v4 }
 0xd97   :  { %v1439_v12 = vmul.f32 %v1428_v11, %v3532_v31 }
 0xd99   :  { %v1442_v14 = vadd.f32 %v1441_v9, %v1439_v12  ;;  %v2773_v12 = vld [vmem:[#allocation2 + $0xee] ss:$0 sm:$0xff] }
 0xd9b   :  { %v1443_v15 = vadd.f32 %v1442_v14, %v1440_v13  ;;  %v2774_v14 = vld [vmem:[#allocation2 + $0xef] ss:$0 sm:$0xff] }
 0xd9d   :  { %3035 = vmatmul.mubr.msk.f32.vlgmr.msra.gmra.mrb[22].mxu1 %vm160_vm3, %v1443_v15 }
 0xd9e   :  { %3060 = vmatprep.mubr.msk.f32.mxu1 %vm3438_vm0, %v3437_v0 }
 0xe70   :  { %v1517_v17 = vpop.f32.mrb[22].mxu1 }
 0xe71   :  { %v1518_v28 = vadd.f32 %v2765_v16, %v1517_v17  ;;  %v3036_v19 = vpop.f32.mrb[23].mxu1 }
 0xe73   :  { %v1521_v23 = vadd.f32 %v1518_v28, %v3593_v54  ;;  %v3234_v54 = vpack.c.bf16 %v1551_v30, %v1550_v29  ;;  %v1827_v29 = vld [vmem:[#allocation5 + $0x30] sm:$0x7f]  ;;  %v1751_v30 = vld [vmem:[#allocation5 + $0x20] sm:$0x1] }
 0xe75   :  { %v1524_v20 = vsel %vm160_vm3, %v1521_v23, 0.0  ;;  %3235 = vmatpush3.bf16.msra.mxu1 %v3234_v54  ;;  %v3249_v54 = vpack.c.bf16 %v1827_v29, %v1826_v27 }
 0xe76   :  { %1525 = vadd.xlane.f32.xlu0 %v1524_v20  ;;  %3236 = vmatprep.subr.bf16.mxu1 %v3439_v8 }
 0xe79   :  { %3238 = vmatpush3.bf16.msra.mxu1 %v3237_v34 }
 0xe7a   :  { %3239 = vmatprep.subr.bf16.mxu1 %v3439_v8 }
 0xe7d   :  { %3241 = vmatpush3.bf16.msra.mxu1 %v3240_v38  ;;  %v1825_v38 = vld [vmem:[%s3738_s2] sm:$0x1] }
 0xe7e   :  { %3242 = vmatprep.subr.bf16.mxu1 %v3439_v8 }
 0xe81   :  { %3244 = vmatpush3.bf16.msra.mxu1 %v3243_v50  ;;  %v2075_v50 = vld [vmem:[#allocation5 + $0xa8] sm:$0xff] }
 0xe82   :  { %3264 = vmatprep.subr.bf16.mxu1 %v3439_v8 }
 0xf03   :  { %v1526_v21 = vpop.xlane.xlu0 %1525 }
 0xf04   :  { %v1527_v31 = vmul.f32 0.0625, %v1526_v21 }
 0xf06   :  { %v1528_v22 = vsub.f32 %v1521_v23, %v1527_v31 }
 0xf08   :  { %v1529_v37 = vmul.f32 %v1528_v22, %v1528_v22 }
 0xf0a   :  { %v1530_v24 = vsel %vm160_vm3, %v1529_v37, 0.0  ;;  %v1828_v37 = vld [vmem:[#allocation5 + $0x38] sm:$0xf] }
 0xf0b   :  { %1531 = vadd.xlane.f32.xlu1 %v1530_v24  ;;  %v2070_v24 = vld [vmem:[#allocation5 + $0x80] sm:$0xff] }
 0xf0c   :  { %v3265_v26 = vpack.c.bf16 %v2071_v25, %v2070_v24 }
 0xf98   :  { %v1532_v39 = vpop.xlane.xlu1 %1531 }
 0xf99   :  { %v1533_v40 = vmul.f32 0.0625, %v1532_v39  ;;  %v3253_v39 = vpack.c.bf16 %v1989_v36, %v1988_v35  ;;  %v2388_v35 = vld [vmem:[#allocation5 + $0x140] sm:$0xff] }
 0xf9b   :  { %v1534_v42 = vadd.f32 1e-05, %v1533_v40  ;;  %v1990_v40 = vld [vmem:[#allocation5 + $0x50] sm:$0xff] }
 0xf9d   :  { %3351 = vrsqrt.f32 %v1534_v42  ;;  %v1991_v42 = vld [vmem:[#allocation5 + $0x58] sm:$0xff] }
 0xfa7   :  { %v3352_v43 = vpop.eup %3351 }
 0xfa8   :  { %v1536_v44 = vmul.f32 %v3352_v43, %v1528_v22  ;;  %v3256_v43 = vpack.c.bf16 %v1991_v42, %v1990_v40  ;;  %v2390_v40 = vld [vmem:[#allocation5 + $0x150] sm:$0xff]  ;;  %v2391_v42 = vld [vmem:[#allocation5 + $0x158] sm:$0xff] }
 0xfaa   :  { %v1541_v46 = vmul.f32 %v2767_v41, %v1536_v44  ;;  %v2072_v41 = vld [vmem:[#allocation5 + $0x90] sm:$0xff]  ;;  %v2073_v44 = vld [vmem:[#allocation5 + $0x98] sm:$0xff] }
 0xfac   :  { %v1546_v47 = vadd.f32 %v2768_v45, %v1541_v46  ;;  %v3268_v45 = vpack.c.bf16 %v2073_v44, %v2072_v41  ;;  %v1992_v46 = vld [vmem:[#allocation5 + $0x60] sm:$0xff] }
 0xfae   :  { %3042 = vmatmul.mubr.msk.f32.vlgmr.msra.gmra.mrb[14].mxu0 %vm160_vm3, %v1546_v47 }
 0xfaf   :  { %3067 = vmatprep.mubr.msk.f32.mxu0 %vm3438_vm0, %v3437_v0  ;;  %3247 = vmatpush3.bf16.msra.mxu0 %v3246_v6  ;;  %v2229_v6 = vld [vmem:[#allocation5 + $0x108] sm:$0x7] }
 0xfb0   :  { %3070 = vmatprep.subr.mxu0 %v3437_v0 }
0x1081   :  { %v1632_v52 = vpop.f32.mrb[14].mxu0 }
0x1082   :  { %v1633_v53 = vadd.f32 %v2769_v51, %v1632_v52  ;;  %v3043_v55 = vpop.f32.mrb[15].mxu0  ;;  %v3271_v51 = vpack.c.bf16 %v2075_v50, %v2074_v49  ;;  %v1994_v52 = vld [vmem:[#allocation5 + $0x70] sm:$0xff]  ;;  %v2078_v49 = vld [vmem:[#allocation5 + $0x101] sm:$0x1] }
0x1084   :  { %v1636_v56 = vmax.f32 %v1633_v53, 0.0  ;;  %v1995_v53 = vld [vmem:[#allocation5 + $0x78] sm:$0xff] }
0x1085   :  { %v3262_v55 = vpack.c.bf16 %v1995_v53, %v1994_v52 }
0x1086   :  { %3061 = vmatmul.mubr.msk.f32.vlgmr.msra.gmra.mrb[24].mxu1 %vm847_vm5, %v1636_v56  ;;  %v2076_v56 = vld [vmem:[#allocation5 + $0xb0] sm:$0xff] }
0x1087   :  { %3117 = vmatprep.mubr.msk.f32.mxu1 %vm3438_vm0, %v3437_v0  ;;  %3266 = vmatpush3.bf16.msra.mxu1 %v3265_v26 }
0x1088   :  { %3267 = vmatprep.subr.bf16.mxu1 %v3439_v8 }
0x108b   :  { %3269 = vmatpush3.bf16.msra.mxu1 %v3268_v45 }
0x108c   :  { %3270 = vmatprep.subr.bf16.mxu1 %v3439_v8 }
0x108f   :  { %3272 = vmatpush3.bf16.msra.mxu1 %v3271_v51 }
0x1090   :  { %3273 = vmatprep.subr.bf16.mxu1 %v3439_v8 }
0x1159   :  { %v1710_v58 = vpop.f32.mrb[24].mxu1 }
0x115a   :  { %v1711_v59 = vadd.f32 %v2771_v57, %v1710_v58  ;;  %v3062_v60 = vpop.f32.mrb[25].mxu1  ;;  %v2077_v57 = vld [vmem:[#allocation5 + $0xb8] sm:$0xff] }
0x115b   :  { %v3274_v58 = vpack.c.bf16 %v2077_v57, %v2076_v56  ;;  %v2543_v56 = vld [vmem:[#allocation5 + $0x178] sm:$0xff]  ;;  %v2544_v57 = vld [vmem:[#allocation5 + $0x180] sm:$0xff] }
0x115c   :  { %v1714_v61 = vadd.f32 %v1711_v59, %v1546_v47  ;;  %v1993_v47 = vld [vmem:[#allocation5 + $0x68] sm:$0xff] }
0x115d   :  { %v3259_v48 = vpack.c.bf16 %v1993_v47, %v1992_v46  ;;  %3275 = vmatpush3.bf16.msra.mxu1 %v3274_v58  ;;  %v2392_v46 = vld [vmem:[#allocation5 + $0x160] sm:$0xff]  ;;  %v2393_v47 = vld [vmem:[#allocation5 + $0x168] sm:$0xff] }
0x115e   :  { %v1717_v62 = vsel %vm160_vm3, %v1714_v61, 0.0  ;;  %3139 = vmatprep.subr.mxu1 %v3437_v0 }
0x115f   :  { %1718 = vadd.xlane.f32.xlu0 %v1717_v62  ;;  %v1985_v62 = vld [vmem:[#allocation5 + $0x3c] sm:$0x1] }
0x11ec   :  { %v1719_v18 = vpop.xlane.xlu0 %1718 }
0x11ed   :  { %v1720_v63 = vmul.f32 0.0625, %v1719_v18 }
0x11ef   :  { %v1721_v1 = vsub.f32 %v1714_v61, %v1720_v63 }
0x11f1   :  { %v1722_v2 = vmul.f32 %v1721_v1, %v1721_v1 }
0x11f3   :  { %v1723_v3 = vsel %vm160_vm3, %v1722_v2, 0.0  ;;  %v2150_v2 = vld [vmem:[#allocation5 + $0xc8] sm:$0xff] }
0x11f4   :  { %1724 = vadd.xlane.f32.xlu1 %v1723_v3 }
0x1281   :  { %v1725_v7 = vpop.xlane.xlu1 %1724 }
0x1282   :  { %v1726_v9 = vmul.f32 0.0625, %v1725_v7  ;;  %v2151_v7 = vld [vmem:[#allocation5 + $0xd0] sm:$0xff] }
0x1284   :  { %v1727_v10 = vadd.f32 1e-05, %v1726_v9  ;;  %v2152_v9 = vld [vmem:[#allocation5 + $0xd8] sm:$0xff] }
0x1286   :  { %3353 = vrsqrt.f32 %v1727_v10  ;;  %v3280_v10 = vpack.c.bf16 %v2152_v9, %v2151_v7 }
0x1290   :  { %v3354_v11 = vpop.eup %3353 }
0x1291   :  { %v1729_v13 = vmul.f32 %v3354_v11, %v1721_v1  ;;  %v2149_v1 = vld [vmem:[#allocation5 + $0xc0] sm:$0xff]  ;;  %v2228_v11 = vld [vmem:[%s3739_s3] sm:$0x1]  ;;  %s3441_s3 = smov [#allocation7]  }
0x1292   :  { %v3277_v4 = vpack.c.bf16 %v2150_v2, %v2149_v1  ;;  %s2711_s26 = sshll.u32 %s3441_s3, 4  ;;  %s2712_s26 = int_to_ptr.vmem [resolvable:$true] %s2711_s26 }
0x1293   :  { %v1734_v15 = vmul.f32 %v2773_v12, %v1729_v13  ;;  %v2153_v12 = vld [vmem:[#allocation5 + $0xe0] sm:$0xff]  ;;  %v2154_v13 = vld [vmem:[#allocation5 + $0xe8] sm:$0xff]  ;;  %s3405_s27 = scalar_lea.vmem %s2712_s26, 16  ;;  %s3409_s28 = scalar_lea.vmem %s2712_s26, 32 }
0x1294   :  { %p3406_p2 = scmp.ne.s32.totalorder %s2712_s26, %s3405_s27  ;;  %p3410_p3 = scmp.lt.s32.totalorder %s2712_s26, %s2712_s26 }
0x1295   :  { %v1739_v16 = vadd.f32 %v2774_v14, %v1734_v15  ;;  %v3283_v14 = vpack.c.bf16 %v2154_v13, %v2153_v12  ;;  %v2155_v15 = vld [vmem:[#allocation5 + $0xf0] sm:$0xff]  ;;  %p3411_p4 = scmp.lt.s32.totalorder %s3409_s28, %s3405_s27 }
0x1297   :  { %v1740_v17 = vsel %vm160_vm3, %v1739_v16, 0.0  ;;  %v2156_v16 = vld [vmem:[#allocation5 + $0xf8] sm:$0xff]  ;;  %p3412_p5 = por %p3411_p4, %p3410_p3 }
0x1298   :  { %v1741_v28 = vrot.slane %v1740_v17, 4 }
0x1299   :  { %p3413_p6 = pnand %p3412_p5, %p3406_p2 }
0x129a   :  { %v1742_v19 = vadd.f32 %v1741_v28, %v1740_v17  ;;  %v3286_v17 = vpack.c.bf16 %v2156_v16, %v2155_v15  ;;  %v2230_v28 = vld [vmem:[#allocation5 + $0x110] sm:$0xff] }
0x129c   :  { %v1743_v23 = vrot.slane %v1742_v19, 2 }
0x129e   :  { %v1744_v20 = vadd.f32 %v1743_v23, %v1742_v19  ;;  %v2231_v19 = vld [vmem:[#allocation5 + $0x118] sm:$0xff] }
0x129f   :  { %v3289_v23 = vpack.c.bf16 %v2231_v19, %v2230_v28 }
0x12a0   :  { %v1745_v21 = vrot.slane %v1744_v20, 1 }
0x12a2   :  { %v1746_v31 = vadd.f32 %v1745_v21, %v1744_v20  ;;  %v2232_v20 = vld [vmem:[#allocation5 + $0x120] sm:$0xff] }
0x12a3   :  { %v1996_v21 = vld [vmem:[#allocation5 + $0x100] sm:$0x1] }
0x12a4   :  { %v1748_v22 = vmul.f32 0.125, %v1746_v31 }
0x12a6   :  { %3068 = vmatmul.mubr.msk.f32.vlgmr.msra.gmra.mrb[16].mxu0 %vm160_vm3, %v1748_v22 }
0x12a7   :  { %3072 = vmatprep.mubr.msk.f32.mxu0 %vm3438_vm0, %v3437_v0  ;;  %3071 = vmatpush3.msk.msra.mxu0 %vm1833_vm6, %v1828_v37 }
0x12a8   :  { %3248 = vmatprep.subr.bf16.mxu0 %v3439_v8 }
0x1379   :  { %v1821_v32 = vpop.f32.mrb[16].mxu0 }
0x137a   :  { %v1822_v33 = vadd.f32 %v1821_v32, %v1751_v30  ;;  %v3069_v34 = vpop.f32.mrb[17].mxu0 }
0x137b   :  { %v2387_v34 = vld [vmem:[#allocation5 + $0x138] sm:$0xff] }
0x137c   :  { %3073 = vmatmul.mubr.msk.f32.vlgmr.msra.gmra.mrb[18].mxu0 %vm1829_vm8, %v1822_v33  ;;  %v2386_v33 = vld [vmem:[#allocation5 + $0x130] sm:$0xff] }
0x137d   :  { %3251 = vmatpush3.bf16.msk.msra.mxu0 %vm3250_vm10, %v3249_v54  ;;  %3079 = vmatprep.mubr.msk.f32.mxu0 %vm3438_vm0, %v3437_v0  ;;  %v2385_v54 = vld [vmem:[#allocation5 + $0x128] sm:$0xff]  ;;  %v3292_v36 = vpack.c.bf16 %v2387_v34, %v2386_v33 }
0x137e   :  { %3252 = vmatprep.subr.bf16.mxu0 %v3439_v8 }
0x1380   :  { %3080 = vmatmul.mubr.msk.f32.vlgmr.msra.gmra.mrb[20].mxu0 %vm1907_vm11, %v1825_v38  ;;  %v2389_v38 = vld [vmem:[#allocation5 + $0x148] sm:$0xff] }
0x1381   :  { %3254 = vmatpush3.bf16.msra.mxu0 %v3253_v39  ;;  %3098 = vmatprep.mubr.msk.f32.mxu0 %vm3438_vm0, %v3437_v0  ;;  %v3295_v39 = vpack.c.bf16 %v2389_v38, %v2388_v35 }
0x1382   :  { %3255 = vmatprep.subr.bf16.mxu0 %v3439_v8 }
0x1385   :  { %3257 = vmatpush3.bf16.msra.mxu0 %v3256_v43  ;;  %v3298_v43 = vpack.c.bf16 %v2391_v42, %v2390_v40 }
0x1386   :  { %3258 = vmatprep.subr.bf16.mxu0 %v3439_v8 }
0x1389   :  { %3260 = vmatpush3.bf16.msra.mxu0 %v3259_v48  ;;  %v3301_v48 = vpack.c.bf16 %v2393_v47, %v2392_v46 }
0x138a   :  { %3261 = vmatprep.subr.bf16.mxu0 %v3439_v8 }
0x138d   :  { %3263 = vmatpush3.bf16.msra.mxu0 %v3262_v55  ;;  %v2542_v55 = vld [vmem:[#allocation5 + $0x170] sm:$0xff] }
0x138e   :  { %3276 = vmatprep.subr.bf16.mxu0 %v3439_v8 }
0x144f   :  { %v1903_v59 = vpop.f32.mrb[18].mxu0 }
0x1450   :  { %v3074_v60 = vpop.f32.mrb[19].mxu0 }
0x1453   :  { %v1981_v61 = vpop.f32.mrb[20].mxu0 }
0x1454   :  { %v1982_v18 = vadd.f32 %v1981_v61, %v1903_v59  ;;  %v3081_v63 = vpop.f32.mrb[21].mxu0  ;;  %v3304_v59 = vpack.c.bf16 %v2544_v57, %v2543_v56 }
0x1456   :  { %v1986_v3 = vadd.f32 %v1985_v62, %v1982_v18  ;;  %v2545_v62 = vld [vmem:[#allocation5 + $0x188] sm:$0xff]  ;;  %v2157_v18 = vld [vmem:[#allocation5 + $0x102] sm:$0x1] }
0x1458   :  { %v1987_v5 = vmax.f32 %v1986_v3, 0.0 }
0x145a   :  { %3099 = vmatmul.mubr.msk.f32.vlgmr.msra.gmra.mrb[22].mxu0 %vm847_vm5, %v1987_v5  ;;  %3118 = vmatmul.mubr.msk.f32.vlgmr.msra.gmra.mrb[26].mxu1 %vm847_vm5, %v1987_v5 }
0x145b   :  { %3278 = vmatpush3.bf16.msra.mxu0 %v3277_v4  ;;  %3140 = vmatpush3.msk.msra.mxu1 %vm69_vm1, %v2229_v6 }
0x145c   :  { %3279 = vmatprep.subr.bf16.mxu0 %v3439_v8  ;;  %3141 = vmatprep.mubr.msk.f32.mxu1 %vm3438_vm0, %v3437_v0 }
0x145d   :  { %3136 = vmatprep.mubr.msk.f32.mxu0 %vm3438_vm0, %v3437_v0  ;;  %3288 = vmatprep.subr.bf16.mxu1 %v3439_v8 }
0x145e   :  { %3142 = vmatmul.mubr.msk.f32.vlgmr.msra.gmra.mrb[28].mxu1 %vm65_vm2, %v2228_v11 }
0x145f   :  { %3281 = vmatpush3.bf16.msra.mxu0 %v3280_v10  ;;  %3150 = vmatprep.mubr.msk.f32.mxu1 %vm3438_vm0, %v3437_v0  ;;  %v2693_v10 = vlaneseq }
0x1460   :  { %3282 = vmatprep.subr.bf16.mxu0 %v3439_v8  ;;  %3290 = vmatpush3.bf16.msra.mxu1 %v3289_v23 }
0x1461   :  { %3148 = vmatprep.subr.mxu1 %v3437_v0 }
0x1463   :  { %3284 = vmatpush3.bf16.msra.mxu0 %v3283_v14 }
0x1464   :  { %3285 = vmatprep.subr.bf16.mxu0 %v3439_v8  ;;  %3149 = vmatpush3.msra.mxu1 %v2232_v20 }
0x1465   :  { %3153 = vmatprep.subr.mxu1 %v3437_v0 }
0x1467   :  { %3287 = vmatpush3.bf16.msra.mxu0 %v3286_v17 }
0x1468   :  { %3291 = vmatprep.subr.bf16.mxu0 %v3439_v8 }
0x146a   :  { %3137 = vmatmul.mubr.msk.f32.vlgmr.msra.gmra.mrb[24].mxu0 %vm847_vm5, %v1987_v5 }
0x146b   :  { %3174 = vmatprep.mubr.msk.f32.mxu0 %vm3438_vm0, %v3437_v0  ;;  %3293 = vmatpush3.bf16.msra.mxu0 %v3292_v36 }
0x146c   :  { %3294 = vmatprep.subr.bf16.mxu0 %v3439_v8 }
0x146f   :  { %3296 = vmatpush3.bf16.msra.mxu0 %v3295_v39 }
0x1470   :  { %3297 = vmatprep.subr.bf16.mxu0 %v3439_v8 }
0x1473   :  { %3299 = vmatpush3.bf16.msra.mxu0 %v3298_v43 }
0x1474   :  { %3300 = vmatprep.subr.bf16.mxu0 %v3439_v8 }
0x1477   :  { %3302 = vmatpush3.bf16.msra.mxu0 %v3301_v48 }
0x152d   :  { %v2066_v31 = vpop.f32.mrb[22].mxu0  ;;  %v2145_v22 = vpop.f32.mrb[26].mxu1 }
0x152e   :  { %v3100_v37 = vpop.f32.mrb[23].mxu0  ;;  %v3119_v24 = vpop.f32.mrb[27].mxu1  ;;  %v2067_v25 = vadd.f32 %v2066_v31, %v1996_v21  ;;  %v2146_v50 = vadd.f32 %v2145_v22, %v2078_v49 }
0x1531   :  { %v2305_v26 = vpop.f32.mrb[28].mxu1 }
0x1532   :  { %v2309_v27 = vmul.f32 %v2305_v26, %v2067_v25  ;;  %v3143_v29 = vpop.f32.mrb[29].mxu1 }
0x1534   :  { %3151 = vmatmul.mubr.msk.f32.vlgmr.msra.gmra.mrb[30].mxu1 %vm2310_vm12, %v2309_v27 }
0x1535   :  { %3155 = vmatprep.mubr.msk.f32.mxu1 %vm3438_vm0, %v3437_v0  ;;  %3154 = vmatpush3.msra.mxu1 %v2385_v54 }
0x1536   :  { %3177 = vmatprep.subr.mxu1 %v3437_v0 }
0x153d   :  { %v2224_v30 = vpop.f32.mrb[24].mxu0 }
0x153e   :  { %v3138_v32 = vpop.f32.mrb[25].mxu0  ;;  %v2225_v63 = vadd.f32 %v2224_v30, %v2157_v18 }
0x1607   :  { %v2380_v41 = vpop.f32.mrb[30].mxu1 }
0x1608   :  { %v2384_v44 = vmax.f32 %v2380_v41, 0.0  ;;  %v3152_v45 = vpop.f32.mrb[31].mxu1 }
0x160a   :  { %3156 = vmatmul.mubr.msk.f32.vlgmr.msra.gmra.mrb[32].mxu1 %vm500_vm4, %v2384_v44 }
0x160b   :  { %3179 = vmatprep.mubr.msk.f32.mxu1 %vm3438_vm0, %v3437_v0  ;;  %3178 = vmatpush3.msra.mxu1 %v2542_v55 }
0x160c   :  { %3303 = vmatprep.subr.bf16.mxu1 %v3439_v8 }
0x16dd   :  { %v2463_v51 = vpop.f32.mrb[32].mxu1 }
0x16de   :  { %v2467_v52 = vmul.f32 %v2463_v51, %v2146_v50  ;;  %v3157_v53 = vpop.f32.mrb[33].mxu1 }
0x16e0   :  { %3175 = vmatmul.mubr.msk.f32.vlgmr.msra.gmra.mrb[26].mxu0 %vm847_vm5, %v2467_v52 }
0x17b3   :  { %v2537_v58 = vpop.f32.mrb[26].mxu0 }
0x17b4   :  { %v2541_v60 = vmax.f32 %v2537_v58, 0.0  ;;  %v3176_v61 = vpop.f32.mrb[27].mxu0 }
0x17b6   :  { %3180 = vmatmul.mubr.msk.f32.vlgmr.msra.gmra.mrb[34].mxu1 %vm500_vm4, %v2541_v60 }
0x17b7   :  { %3305 = vmatpush3.bf16.msra.mxu1 %v3304_v59  ;;  %3188 = vmatprep.mubr.msk.f32.mxu1 %vm3438_vm0, %v3437_v0 }
0x17b8   :  { %3186 = vmatprep.subr.mxu1 %v3437_v0  ;;  %v2694_v0 = vand.u32 127, %v2693_v10 }
0x17ba   :  { %vm2701_vm13 = vcmp.eq.s32.totalorder %v2694_v0, 1 }
0x17bb   :  { %3187 = vmatpush3.msra.mxu1 %v2545_v62 }
0x1889   :  { %v2615_v1 = vpop.f32.mrb[34].mxu1 }
0x188a   :  { %v2619_v8 = vmul.f32 %v2615_v1, %v2225_v63  ;;  %v3181_v2 = vpop.f32.mrb[35].mxu1 }
0x188c   :  { %3189 = vmatmul.mubr.msk.f32.vlgmr.msra.gmra.mrb[36].mxu1 %vm2310_vm12, %v2619_v8 }
0x195f   :  { %v2689_v3 = vpop.f32.mrb[36].mxu1 }
0x1960   :  { %v2695_v4 = vsub.f32 0.0, %v2689_v3  ;;  %v3190_v5 = vpop.f32.mrb[37].mxu1 }
0x1962   :  { %v2696_v6 = vmul.f32 1.442695, %v2695_v4 }
0x1964   :  { %3355 = vpow2.f32 %v2696_v6 }
0x1965   :  { %3357 = vtanh.f32 %v2689_v3 }
0x196e   :  { %v3356_v7 = vpop.eup %3355 }
0x196f   :  { %v2698_v9 = vadd.f32 1.0, %v3356_v7  ;;  %v3358_v11 = vpop.eup %3357 }
0x1971   :  { %3359 = vrcp.f32 %v2698_v9 }
0x197b   :  { %v3360_v12 = vpop.eup %3359 }
0x197c   :  { %v2703_v13 = vsel %vm2701_vm13, %v3358_v11, %v3360_v12 }
0x197d   :  { %2704 = vst [vmem:[#allocation7] sm:$0x1] %v2703_v13 }
0x197e   :  { %3416 = shalt.err (!%p3413_p6)
}
0x197f   :  { %s3417_s7 = scalar_lea.hbm %s3742_s6, 16 }
0x1980   :  { %p3418_p7 = scmp.ne.s32.totalorder %s3742_s6, %s3417_s7  ;;  %p3421_p8 = scmp.lt.u32.totalorder %s3417_s7, %s3742_s6 }
0x1982   :  { %p3423_p9 = pnand %p3421_p8, %p3418_p7 }
0x1984   :  { %3426 = shalt.err (!%p3423_p9)
}
0x1985   :  { %2714 = dma.vmem_to_hbm [thread:$0]  %s2712_s26, 16, %s3742_s6, [#allocation4]  }
0x1986   :  { %3431 = dma.done.wait [#allocation4], 16  }
0x1987   :  { %3432 = vsyncadd [#allocation4], 4294967280 }
0x1988   :  { %2718 = vsyncpa [#allocation3], 1 }
0x1989   :  { %2719 = vsyncpa [#allocation6], 1 }
0x198a   :  { %2720 = vsyncpa [#allocation4], 1 }

</bundles_post_ra>
